<compile_context>
chip_gen: v5e
topology: v5e:2x2
jax: 0.10.0
libtpu: 0.0.40
codegen_flags: <defaults>
</compile_context>

<pallas_src>
import math
from functools import partial

import jax
import jax.numpy as jnp
from jax import lax
from jax.experimental import pallas as pl
from jax.experimental.pallas import tpu as pltpu


def _round_up(x, m):
    return ((x + m - 1) // m) * m


def _reprogramming_kernel(tgt_ref, k_ref, v_ref, wq_ref, wo_ref, bo_ref,
                          out_ref, ctx_ref, *, n_heads, d_keys):
    """One grid step (i, j): row tile i of the folded (B_N*L) target, column
    tile j of d_llm.

    tgt_ref: (tm, d_model) bf16         k_ref/v_ref: (H, S, E) bf16
    wq_ref : (H, d_model, E) bf16 (1/sqrt(E) pre-folded)
    wo_ref : (H*E, tn) bf16             bo_ref: (1, tn) f32
    out_ref: (tm, tn)                   ctx_ref: (tm, H*E) bf16 VMEM scratch
    """
    H, E = n_heads, d_keys

    # Attention (Q projection, scores, softmax, A @ V) only depends on the row
    # tile i, so compute it once per row tile (j is the inner "arbitrary" axis)
    # and keep the result in the ctx scratch for the remaining d_llm tiles.
    @pl.when(pl.program_id(1) == 0)
    def _attend():
        tgt = tgt_ref[...]                                            # (tm, d_model) bf16
        for h in range(H):
            # q_h = tgt @ (Wq_h / sqrt(E));  f32 accumulation, bf16 operand out.
            qh = jnp.dot(tgt, wq_ref[h],
                         preferred_element_type=jnp.float32)          # (tm, E) f32
            # scores = q_h @ k_h^T : contract last dims, no explicit transpose.
            s = lax.dot_general(qh.astype(tgt.dtype), k_ref[h],
                                dimension_numbers=(((1,), (1,)), ((), ())),
                                preferred_element_type=jnp.float32)   # (tm, S) f32
            # Softmax kept in f32 (VPU/EUP); approx reciprocal error (~1e-3) is
            # below the bf16 operand error budget.
            s = s - jnp.max(s, axis=-1, keepdims=True)
            p = jnp.exp(s)
            a = p * pl.reciprocal(jnp.sum(p, axis=-1, keepdims=True), approx=True)
            # ctx_h = A_h @ V_h with bf16 operands, f32 accumulation.
            ctx = jnp.dot(a.astype(v_ref.dtype), v_ref[h],
                          preferred_element_type=jnp.float32)          # (tm, E) f32
            ctx_ref[:, h * E:(h + 1) * E] = ctx.astype(ctx_ref.dtype)

    # Merged output projection: single (tm, H*E) @ (H*E, tn) MXU matmul + bias.
    out = jnp.dot(ctx_ref[...], wo_ref[...],
                  preferred_element_type=jnp.float32)                  # (tm, tn) f32
    out_ref[...] = (out + bo_ref[...]).astype(out_ref.dtype)


def reprogramming_layer(target, source, value, params, *, n_heads,
                        tm=None, tn=None,
                        compute_dtype=jnp.bfloat16,
                        vmem_limit_bytes=64 * 1024 * 1024,
                        single_buffer_invariants=True):
    """Pallas-backed forward of ReprogrammingLayer.

    target: (B_N, L, d_model), source/value: (S, d_llm) -> (B_N, L, d_llm).

    Notes:
      * `vmem_limit_bytes` defaults to 64 MiB (v7x physical VMEM per core); on
        v5e / v6e (128 MiB) it can be raised to ~96-100 MiB and `tm` swept
        over {256, 512, 1024}.
      * If `tn` < d_llm it must be a multiple of 128 and divide d_llm.
    """
    B_N, L, d_model = target.shape
    S, d_llm = source.shape
    d_hidden = params["wq"].shape[1]              # H * E
    H = n_heads
    E = d_hidden // H
    scale = 1.0 / math.sqrt(E)

    # --- wrapper-side (XLA) preprocessing: batch-invariant, done once ---------
    # K / V projections hoisted out of the kernel; emitted head-major in bf16.
    k_proj = source @ params["wk"] + params["bk"]                       # (S, H*E) f32
    v_proj = value @ params["wv"] + params["bv"]                        # (S, H*E) f32
    k_hse = k_proj.reshape(S, H, E).transpose(1, 0, 2).astype(compute_dtype)   # (H, S, E)
    v_hse = v_proj.reshape(S, H, E).transpose(1, 0, 2).astype(compute_dtype)   # (H, S, E)
    # 1/sqrt(E) folded into Wq; head-major layout (H, d_model, E).
    wq_hde = (params["wq"] * scale).reshape(d_model, H, E).transpose(1, 0, 2) \
        .astype(compute_dtype)                                          # (H, d_model, E)
    wo = params["wo"].astype(compute_dtype)                             # (H*E, d_llm)
    bo = params["bo"].astype(jnp.float32)                               # (1, d_llm)

    # --- fold batch into rows and tile ----------------------------------------
    M = B_N * L
    if tm is None:
        # >= 2 row tiles (both v7x TensorCores get work); 512 cap amortizes
        # per-grid-step overhead on v5e/v6e without blowing VMEM.
        tm = min(512, _round_up(max(M // 2, 8), 8))
    m_pad = _round_up(M, tm)
    tgt2 = target.reshape(M, d_model).astype(compute_dtype)
    if m_pad != M:
        tgt2 = jnp.pad(tgt2, ((0, m_pad - M), (0, 0)))

    if tn is None:
        tn = 1024 if (d_llm > 1024 and d_llm % 1024 == 0) else d_llm
    assert d_llm % tn == 0 and (tn == d_llm or tn % 128 == 0), (d_llm, tn)

    kernel = partial(_reprogramming_kernel, n_heads=H, d_keys=E)
    grid = (m_pad // tm, d_llm // tn)

    def _run(single_buffer):
        # Grid-invariant blocks never change index -> single-buffer them when
        # the JAX build supports pipeline_mode (saves their 2x VMEM copies).
        inv = dict(pipeline_mode=pl.Buffered(1)) if single_buffer else {}
        grid_spec = pltpu.PrefetchScalarGridSpec(
            num_scalar_prefetch=0,
            grid=grid,
            in_specs=[
                pl.BlockSpec((tm, d_model), lambda i, j: (i, 0)),            # target rows
                pl.BlockSpec((H, S, E), lambda i, j: (0, 0, 0), **inv),      # K head-major
                pl.BlockSpec((H, S, E), lambda i, j: (0, 0, 0), **inv),      # V head-major
                pl.BlockSpec((H, d_model, E), lambda i, j: (0, 0, 0), **inv),  # Wq head-major
                pl.BlockSpec((d_hidden, tn), lambda i, j: (0, j)),           # Wo column tile
                pl.BlockSpec((1, tn), lambda i, j: (0, j)),                  # bias column tile
            ],
            out_specs=pl.BlockSpec((tm, tn), lambda i, j: (i, j)),
            scratch_shapes=[pltpu.VMEM((tm, d_hidden), compute_dtype)],      # ctx (per row tile)
        )
        return pl.pallas_call(
            kernel,
            out_shape=jax.ShapeDtypeStruct((m_pad, d_llm), target.dtype),
            grid_spec=grid_spec,
            compiler_params=pltpu.CompilerParams(
                dimension_semantics=("parallel", "arbitrary"),
                vmem_limit_bytes=vmem_limit_bytes,
            ),
        )(tgt2, k_hse, v_hse, wq_hde, wo, bo)

    if single_buffer_invariants:
        try:
            out = _run(True)
        except Exception:
            # pipeline_mode=pl.Buffered(1) not supported by this JAX build;
            # fall back to default (double-buffered) BlockSpecs.
            out = _run(False)
    else:
        out = _run(False)

    return out[:M].reshape(B_N, L, d_llm)


def reference_forward(target, source, value, params, *, n_heads):
    """Plain-JAX f32 reference matching the PyTorch module (eval-mode dropout)."""
    B_N, L, _ = target.shape
    S, _ = source.shape
    H = n_heads

    q = target @ params["wq"]                      # (B_N, L, H*E)
    k = source @ params["wk"] + params["bk"][0]    # (S, H*E)
    v = value @ params["wv"] + params["bv"][0]     # (S, H*E)

    E = q.shape[-1] // H
    q = q.reshape(B_N, L, H, E)
    k = k.reshape(S, H, E)
    v = v.reshape(S, H, E)

    scores = jnp.einsum("blhe,she->bhls", q, k)
    A = jax.nn.softmax(scores / math.sqrt(E), axis=-1)
    out = jnp.einsum("bhls,she->blhe", A, v).reshape(B_N, L, H * E)
    return out @ params["wo"] + params["bo"][0]


def init_params(key, d_model, n_heads, d_llm, d_keys=None):
    d_keys = d_keys or d_model // n_heads
    d_hidden = d_keys * n_heads
    ks = jax.random.split(key, 8)

    def lin_w(k, fan_in, fan_out):
        bound = 1.0 / math.sqrt(fan_in)
        # stored as (in, out) == torch weight (out, in) transposed
        return jax.random.uniform(k, (fan_in, fan_out), jnp.float32, -bound, bound)

    def lin_b(k, fan_in, fan_out):
        bound = 1.0 / math.sqrt(fan_in)
        return jax.random.uniform(k, (1, fan_out), jnp.float32, -bound, bound)

    return {
        "wq": lin_w(ks[0], d_model, d_hidden),           # query_projection (no bias)
        "wk": lin_w(ks[1], d_llm, d_hidden),
        "bk": lin_b(ks[2], d_llm, d_hidden),
        "wv": lin_w(ks[3], d_llm, d_hidden),
        "bv": lin_b(ks[4], d_llm, d_hidden),
        "wo": lin_w(ks[5], d_hidden, d_llm),
        "bo": lin_b(ks[6], d_hidden, d_llm),
    }


if __name__ == "__main__":
    # Small shapes consistent with the module's forward; tn=128 exercises both
    # grid axes (2 row tiles x 2 d_llm tiles) including the ctx-scratch reuse.
    B_N, L, d_model = 2, 8, 32
    n_heads = 4                      # d_keys = d_model // n_heads = 8
    d_llm, S = 256, 16

    key = jax.random.PRNGKey(0)
    k_tgt, k_src, k_val, k_par = jax.random.split(key, 4)

    target = jax.random.normal(k_tgt, (B_N, L, d_model), jnp.float32)
    source = jax.random.normal(k_src, (S, d_llm), jnp.float32)
    value = jax.random.normal(k_val, (S, d_llm), jnp.float32)
    params = init_params(k_par, d_model, n_heads, d_llm)

    out = reprogramming_layer(target, source, value, params, n_heads=n_heads, tn=128)
    out = jax.block_until_ready(out)

    ref = reference_forward(target, source, value, params, n_heads=n_heads)
    assert out.shape == (B_N, L, d_llm), out.shape
    # bf16 MXU operands + approx-reciprocal softmax => ~1e-2-level deviation
    # from the f32 reference at these magnitudes.
    max_err = float(jnp.max(jnp.abs(out - ref)))
    assert jnp.allclose(out, ref, atol=3e-2, rtol=3e-2), max_err

    print("KERNEL_OK")
</pallas_src>

<mosaic_0001>
module attributes {stable_mosaic.version = 11 : i64} {
  func.func @_reprogramming_kernel(%arg0: i32, %arg1: i32, %arg2: memref<8x32xbf16, #tpu.memory_space<vmem>>, %arg3: memref<4x16x8xbf16, #tpu.memory_space<vmem>>, %arg4: memref<4x16x8xbf16, #tpu.memory_space<vmem>>, %arg5: memref<4x32x8xbf16, #tpu.memory_space<vmem>>, %arg6: memref<32x128xbf16, #tpu.memory_space<vmem>>, %arg7: memref<1x128xf32, #tpu.memory_space<vmem>>, %arg8: memref<8x128xf32, #tpu.memory_space<vmem>>, %arg9: memref<8x32xbf16, #tpu.memory_space<vmem>>) attributes {dimension_semantics = [#tpu.dimension_semantics<parallel>, #tpu.dimension_semantics<arbitrary>], iteration_bounds = array<i64: 2, 2>, scalar_prefetch = 0 : i64, scratch_operands = 1 : i64, tpu.core_type = #tpu.core_type<tc>, window_params = [{transform_indices = @transform_0, window_bounds = array<i64: 8, 32>}, {pipeline_mode = #tpu.pipeline_mode<synchronous>, transform_indices = @transform_1, window_bounds = array<i64: 4, 16, 8>}, {pipeline_mode = #tpu.pipeline_mode<synchronous>, transform_indices = @transform_2, window_bounds = array<i64: 4, 16, 8>}, {pipeline_mode = #tpu.pipeline_mode<synchronous>, transform_indices = @transform_3, window_bounds = array<i64: 4, 32, 8>}, {transform_indices = @transform_4, window_bounds = array<i64: 32, 128>}, {transform_indices = @transform_5, window_bounds = array<i64: 1, 128>}, {transform_indices = @transform_6, window_bounds = array<i64: 8, 128>}]} {
    %c0_i32 = arith.constant 0 : i32
    %0 = arith.cmpi eq, %arg1, %c0_i32 : i32
    %1 = arith.extui %0 : i1 to i32
    %c0_i32_0 = arith.constant 0 : i32
    %2 = arith.cmpi ne, %1, %c0_i32_0 : i32
    scf.if %2 {
      %c0_8 = arith.constant 0 : index
      %c0_9 = arith.constant 0 : index
      %10 = vector.load %arg2[%c0_8, %c0_9] : memref<8x32xbf16, #tpu.memory_space<vmem>>, vector<8x32xbf16>
      %c0_10 = arith.constant 0 : index
      %c0_11 = arith.constant 0 : index
      %c0_12 = arith.constant 0 : index
      %11 = vector.load %arg5[%c0_10, %c0_11, %c0_12] : memref<4x32x8xbf16, #tpu.memory_space<vmem>>, vector<1x32x8xbf16>
      %12 = vector.shape_cast %11 : vector<1x32x8xbf16> to vector<32x8xbf16>
      %cst_13 = arith.constant dense<0.000000e+00> : vector<8x8xf32>
      %13 = tpu.matmul %10, %12, %cst_13 {dimension_numbers = #tpu.dot_dimension_numbers<[1], [0], [0], [1], [0, 0, 1, 1], [], []>} : vector<8x32xbf16>, vector<32x8xbf16>, vector<8x8xf32> -> vector<8x8xf32>
      %14 = arith.truncf %13 : vector<8x8xf32> to vector<8x8xbf16>
      %c0_14 = arith.constant 0 : index
      %c0_15 = arith.constant 0 : index
      %c0_16 = arith.constant 0 : index
      %15 = vector.load %arg3[%c0_14, %c0_15, %c0_16] : memref<4x16x8xbf16, #tpu.memory_space<vmem>>, vector<1x16x8xbf16>
      %16 = vector.shape_cast %15 : vector<1x16x8xbf16> to vector<16x8xbf16>
      %cst_17 = arith.constant dense<0.000000e+00> : vector<8x16xf32>
      %17 = tpu.matmul %14, %16, %cst_17 {dimension_numbers = #tpu.dot_dimension_numbers<[1], [1], [0], [0], [0, 0, 1, 0], [], []>} : vector<8x8xbf16>, vector<16x8xbf16>, vector<8x16xf32> -> vector<8x16xf32>
      %cst_18 = arith.constant dense<0xFF800000> : vector<8xf32>
      %18 = vector.multi_reduction <maximumf>, %17, %cst_18 [1] : vector<8x16xf32> to vector<8xf32>
      %19 = vector.shape_cast %18 : vector<8xf32> to vector<8x1xf32>
      %20 = vector.broadcast %19 : vector<8x1xf32> to vector<8x16xf32>
      %21 = arith.subf %17, %20 : vector<8x16xf32>
      %22 = math.exp %21 : vector<8x16xf32>
      %cst_19 = arith.constant dense<0.000000e+00> : vector<8xf32>
      %23 = vector.multi_reduction <add>, %22, %cst_19 [1] : vector<8x16xf32> to vector<8xf32>
      %24 = vector.shape_cast %23 : vector<8xf32> to vector<8x1xf32>
      %25 = tpu.reciprocal %24 {approx = true} : vector<8x1xf32> -> vector<8x1xf32>
      %26 = vector.broadcast %25 : vector<8x1xf32> to vector<8x16xf32>
      %27 = arith.mulf %22, %26 : vector<8x16xf32>
      %28 = arith.truncf %27 : vector<8x16xf32> to vector<8x16xbf16>
      %c0_20 = arith.constant 0 : index
      %c0_21 = arith.constant 0 : index
      %c0_22 = arith.constant 0 : index
      %29 = vector.load %arg4[%c0_20, %c0_21, %c0_22] : memref<4x16x8xbf16, #tpu.memory_space<vmem>>, vector<1x16x8xbf16>
      %30 = vector.shape_cast %29 : vector<1x16x8xbf16> to vector<16x8xbf16>
      %cst_23 = arith.constant dense<0.000000e+00> : vector<8x8xf32>
      %31 = tpu.matmul %28, %30, %cst_23 {dimension_numbers = #tpu.dot_dimension_numbers<[1], [0], [0], [1], [0, 0, 1, 1], [], []>} : vector<8x16xbf16>, vector<16x8xbf16>, vector<8x8xf32> -> vector<8x8xf32>
      %32 = arith.truncf %31 : vector<8x8xf32> to vector<8x8xbf16>
      %c0_24 = arith.constant 0 : index
      %c0_25 = arith.constant 0 : index
      %33 = vector.load %arg9[%c0_24, %c0_25] : memref<8x32xbf16, #tpu.memory_space<vmem>>, vector<8x8xbf16>
      tpu.vector_store %arg9[%c0_24, %c0_25], %32 {strides = array<i32>} : memref<8x32xbf16, #tpu.memory_space<vmem>>, vector<8x8xbf16>,
      %c1 = arith.constant 1 : index
      %c0_26 = arith.constant 0 : index
      %c0_27 = arith.constant 0 : index
      %34 = vector.load %arg5[%c1, %c0_26, %c0_27] : memref<4x32x8xbf16, #tpu.memory_space<vmem>>, vector<1x32x8xbf16>
      %35 = vector.shape_cast %34 : vector<1x32x8xbf16> to vector<32x8xbf16>
      %cst_28 = arith.constant dense<0.000000e+00> : vector<8x8xf32>
      %36 = tpu.matmul %10, %35, %cst_28 {dimension_numbers = #tpu.dot_dimension_numbers<[1], [0], [0], [1], [0, 0, 1, 1], [], []>} : vector<8x32xbf16>, vector<32x8xbf16>, vector<8x8xf32> -> vector<8x8xf32>
      %37 = arith.truncf %36 : vector<8x8xf32> to vector<8x8xbf16>
      %c1_29 = arith.constant 1 : index
      %c0_30 = arith.constant 0 : index
      %c0_31 = arith.constant 0 : index
      %38 = vector.load %arg3[%c1_29, %c0_30, %c0_31] : memref<4x16x8xbf16, #tpu.memory_space<vmem>>, vector<1x16x8xbf16>
      %39 = vector.shape_cast %38 : vector<1x16x8xbf16> to vector<16x8xbf16>
      %cst_32 = arith.constant dense<0.000000e+00> : vector<8x16xf32>
      %40 = tpu.matmul %37, %39, %cst_32 {dimension_numbers = #tpu.dot_dimension_numbers<[1], [1], [0], [0], [0, 0, 1, 0], [], []>} : vector<8x8xbf16>, vector<16x8xbf16>, vector<8x16xf32> -> vector<8x16xf32>
      %cst_33 = arith.constant dense<0xFF800000> : vector<8xf32>
      %41 = vector.multi_reduction <maximumf>, %40, %cst_33 [1] : vector<8x16xf32> to vector<8xf32>
      %42 = vector.shape_cast %41 : vector<8xf32> to vector<8x1xf32>
      %43 = vector.broadcast %42 : vector<8x1xf32> to vector<8x16xf32>
      %44 = arith.subf %40, %43 : vector<8x16xf32>
      %45 = math.exp %44 : vector<8x16xf32>
      %cst_34 = arith.constant dense<0.000000e+00> : vector<8xf32>
      %46 = vector.multi_reduction <add>, %45, %cst_34 [1] : vector<8x16xf32> to vector<8xf32>
      %47 = vector.shape_cast %46 : vector<8xf32> to vector<8x1xf32>
      %48 = tpu.reciprocal %47 {approx = true} : vector<8x1xf32> -> vector<8x1xf32>
      %49 = vector.broadcast %48 : vector<8x1xf32> to vector<8x16xf32>
      %50 = arith.mulf %45, %49 : vector<8x16xf32>
      %51 = arith.truncf %50 : vector<8x16xf32> to vector<8x16xbf16>
      %c1_35 = arith.constant 1 : index
      %c0_36 = arith.constant 0 : index
      %c0_37 = arith.constant 0 : index
      %52 = vector.load %arg4[%c1_35, %c0_36, %c0_37] : memref<4x16x8xbf16, #tpu.memory_space<vmem>>, vector<1x16x8xbf16>
      %53 = vector.shape_cast %52 : vector<1x16x8xbf16> to vector<16x8xbf16>
      %cst_38 = arith.constant dense<0.000000e+00> : vector<8x8xf32>
      %54 = tpu.matmul %51, %53, %cst_38 {dimension_numbers = #tpu.dot_dimension_numbers<[1], [0], [0], [1], [0, 0, 1, 1], [], []>} : vector<8x16xbf16>, vector<16x8xbf16>, vector<8x8xf32> -> vector<8x8xf32>
      %55 = arith.truncf %54 : vector<8x8xf32> to vector<8x8xbf16>
      %c0_39 = arith.constant 0 : index
      %c8 = arith.constant 8 : index
      %56 = vector.load %arg9[%c0_39, %c8] : memref<8x32xbf16, #tpu.memory_space<vmem>>, vector<8x8xbf16>
      tpu.vector_store %arg9[%c0_39, %c8], %55 {strides = array<i32>} : memref<8x32xbf16, #tpu.memory_space<vmem>>, vector<8x8xbf16>,
      %c2 = arith.constant 2 : index
      %c0_40 = arith.constant 0 : index
      %c0_41 = arith.constant 0 : index
      %57 = vector.load %arg5[%c2, %c0_40, %c0_41] : memref<4x32x8xbf16, #tpu.memory_space<vmem>>, vector<1x32x8xbf16>
      %58 = vector.shape_cast %57 : vector<1x32x8xbf16> to vector<32x8xbf16>
      %cst_42 = arith.constant dense<0.000000e+00> : vector<8x8xf32>
      %59 = tpu.matmul %10, %58, %cst_42 {dimension_numbers = #tpu.dot_dimension_numbers<[1], [0], [0], [1], [0, 0, 1, 1], [], []>} : vector<8x32xbf16>, vector<32x8xbf16>, vector<8x8xf32> -> vector<8x8xf32>
      %60 = arith.truncf %59 : vector<8x8xf32> to vector<8x8xbf16>
      %c2_43 = arith.constant 2 : index
      %c0_44 = arith.constant 0 : index
      %c0_45 = arith.constant 0 : index
      %61 = vector.load %arg3[%c2_43, %c0_44, %c0_45] : memref<4x16x8xbf16, #tpu.memory_space<vmem>>, vector<1x16x8xbf16>
      %62 = vector.shape_cast %61 : vector<1x16x8xbf16> to vector<16x8xbf16>
      %cst_46 = arith.constant dense<0.000000e+00> : vector<8x16xf32>
      %63 = tpu.matmul %60, %62, %cst_46 {dimension_numbers = #tpu.dot_dimension_numbers<[1], [1], [0], [0], [0, 0, 1, 0], [], []>} : vector<8x8xbf16>, vector<16x8xbf16>, vector<8x16xf32> -> vector<8x16xf32>
      %cst_47 = arith.constant dense<0xFF800000> : vector<8xf32>
      %64 = vector.multi_reduction <maximumf>, %63, %cst_47 [1] : vector<8x16xf32> to vector<8xf32>
      %65 = vector.shape_cast %64 : vector<8xf32> to vector<8x1xf32>
      %66 = vector.broadcast %65 : vector<8x1xf32> to vector<8x16xf32>
      %67 = arith.subf %63, %66 : vector<8x16xf32>
      %68 = math.exp %67 : vector<8x16xf32>
      %cst_48 = arith.constant dense<0.000000e+00> : vector<8xf32>
      %69 = vector.multi_reduction <add>, %68, %cst_48 [1] : vector<8x16xf32> to vector<8xf32>
      %70 = vector.shape_cast %69 : vector<8xf32> to vector<8x1xf32>
      %71 = tpu.reciprocal %70 {approx = true} : vector<8x1xf32> -> vector<8x1xf32>
      %72 = vector.broadcast %71 : vector<8x1xf32> to vector<8x16xf32>
      %73 = arith.mulf %68, %72 : vector<8x16xf32>
      %74 = arith.truncf %73 : vector<8x16xf32> to vector<8x16xbf16>
      %c2_49 = arith.constant 2 : index
      %c0_50 = arith.constant 0 : index
      %c0_51 = arith.constant 0 : index
      %75 = vector.load %arg4[%c2_49, %c0_50, %c0_51] : memref<4x16x8xbf16, #tpu.memory_space<vmem>>, vector<1x16x8xbf16>
      %76 = vector.shape_cast %75 : vector<1x16x8xbf16> to vector<16x8xbf16>
      %cst_52 = arith.constant dense<0.000000e+00> : vector<8x8xf32>
      %77 = tpu.matmul %74, %76, %cst_52 {dimension_numbers = #tpu.dot_dimension_numbers<[1], [0], [0], [1], [0, 0, 1, 1], [], []>} : vector<8x16xbf16>, vector<16x8xbf16>, vector<8x8xf32> -> vector<8x8xf32>
      %78 = arith.truncf %77 : vector<8x8xf32> to vector<8x8xbf16>
      %c0_53 = arith.constant 0 : index
      %c16 = arith.constant 16 : index
      %79 = vector.load %arg9[%c0_53, %c16] : memref<8x32xbf16, #tpu.memory_space<vmem>>, vector<8x8xbf16>
      tpu.vector_store %arg9[%c0_53, %c16], %78 {strides = array<i32>} : memref<8x32xbf16, #tpu.memory_space<vmem>>, vector<8x8xbf16>,
      %c3 = arith.constant 3 : index
      %c0_54 = arith.constant 0 : index
      %c0_55 = arith.constant 0 : index
      %80 = vector.load %arg5[%c3, %c0_54, %c0_55] : memref<4x32x8xbf16, #tpu.memory_space<vmem>>, vector<1x32x8xbf16>
      %81 = vector.shape_cast %80 : vector<1x32x8xbf16> to vector<32x8xbf16>
      %cst_56 = arith.constant dense<0.000000e+00> : vector<8x8xf32>
      %82 = tpu.matmul %10, %81, %cst_56 {dimension_numbers = #tpu.dot_dimension_numbers<[1], [0], [0], [1], [0, 0, 1, 1], [], []>} : vector<8x32xbf16>, vector<32x8xbf16>, vector<8x8xf32> -> vector<8x8xf32>
      %83 = arith.truncf %82 : vector<8x8xf32> to vector<8x8xbf16>
      %c3_57 = arith.constant 3 : index
      %c0_58 = arith.constant 0 : index
      %c0_59 = arith.constant 0 : index
      %84 = vector.load %arg3[%c3_57, %c0_58, %c0_59] : memref<4x16x8xbf16, #tpu.memory_space<vmem>>, vector<1x16x8xbf16>
      %85 = vector.shape_cast %84 : vector<1x16x8xbf16> to vector<16x8xbf16>
      %cst_60 = arith.constant dense<0.000000e+00> : vector<8x16xf32>
      %86 = tpu.matmul %83, %85, %cst_60 {dimension_numbers = #tpu.dot_dimension_numbers<[1], [1], [0], [0], [0, 0, 1, 0], [], []>} : vector<8x8xbf16>, vector<16x8xbf16>, vector<8x16xf32> -> vector<8x16xf32>
      %cst_61 = arith.constant dense<0xFF800000> : vector<8xf32>
      %87 = vector.multi_reduction <maximumf>, %86, %cst_61 [1] : vector<8x16xf32> to vector<8xf32>
      %88 = vector.shape_cast %87 : vector<8xf32> to vector<8x1xf32>
      %89 = vector.broadcast %88 : vector<8x1xf32> to vector<8x16xf32>
      %90 = arith.subf %86, %89 : vector<8x16xf32>
      %91 = math.exp %90 : vector<8x16xf32>
      %cst_62 = arith.constant dense<0.000000e+00> : vector<8xf32>
      %92 = vector.multi_reduction <add>, %91, %cst_62 [1] : vector<8x16xf32> to vector<8xf32>
      %93 = vector.shape_cast %92 : vector<8xf32> to vector<8x1xf32>
      %94 = tpu.reciprocal %93 {approx = true} : vector<8x1xf32> -> vector<8x1xf32>
      %95 = vector.broadcast %94 : vector<8x1xf32> to vector<8x16xf32>
      %96 = arith.mulf %91, %95 : vector<8x16xf32>
      %97 = arith.truncf %96 : vector<8x16xf32> to vector<8x16xbf16>
      %c3_63 = arith.constant 3 : index
      %c0_64 = arith.constant 0 : index
      %c0_65 = arith.constant 0 : index
      %98 = vector.load %arg4[%c3_63, %c0_64, %c0_65] : memref<4x16x8xbf16, #tpu.memory_space<vmem>>, vector<1x16x8xbf16>
      %99 = vector.shape_cast %98 : vector<1x16x8xbf16> to vector<16x8xbf16>
      %cst_66 = arith.constant dense<0.000000e+00> : vector<8x8xf32>
      %100 = tpu.matmul %97, %99, %cst_66 {dimension_numbers = #tpu.dot_dimension_numbers<[1], [0], [0], [1], [0, 0, 1, 1], [], []>} : vector<8x16xbf16>, vector<16x8xbf16>, vector<8x8xf32> -> vector<8x8xf32>
      %101 = arith.truncf %100 : vector<8x8xf32> to vector<8x8xbf16>
      %c0_67 = arith.constant 0 : index
      %c24 = arith.constant 24 : index
      %102 = vector.load %arg9[%c0_67, %c24] : memref<8x32xbf16, #tpu.memory_space<vmem>>, vector<8x8xbf16>
      tpu.vector_store %arg9[%c0_67, %c24], %101 {strides = array<i32>} : memref<8x32xbf16, #tpu.memory_space<vmem>>, vector<8x8xbf16>,
    } else {
    }
    %c0 = arith.constant 0 : index
    %c0_1 = arith.constant 0 : index
    %3 = vector.load %arg9[%c0, %c0_1] : memref<8x32xbf16, #tpu.memory_space<vmem>>, vector<8x32xbf16>
    %c0_2 = arith.constant 0 : index
    %c0_3 = arith.constant 0 : index
    %4 = vector.load %arg6[%c0_2, %c0_3] : memref<32x128xbf16, #tpu.memory_space<vmem>>, vector<32x128xbf16>
    %cst = arith.constant dense<0.000000e+00> : vector<8x128xf32>
    %5 = tpu.matmul %3, %4, %cst {dimension_numbers = #tpu.dot_dimension_numbers<[1], [0], [0], [1], [0, 0, 1, 1], [], []>} : vector<8x32xbf16>, vector<32x128xbf16>, vector<8x128xf32> -> vector<8x128xf32>
    %c0_4 = arith.constant 0 : index
    %c0_5 = arith.constant 0 : index
    %6 = vector.load %arg7[%c0_4, %c0_5] : memref<1x128xf32, #tpu.memory_space<vmem>>, vector<1x128xf32>
    %7 = vector.broadcast %6 : vector<1x128xf32> to vector<8x128xf32>
    %8 = arith.addf %5, %7 : vector<8x128xf32>
    %c0_6 = arith.constant 0 : index
    %c0_7 = arith.constant 0 : index
    %9 = vector.load %arg8[%c0_6, %c0_7] : memref<8x128xf32, #tpu.memory_space<vmem>>, vector<8x128xf32>
    tpu.vector_store %arg8[%c0_6, %c0_7], %8 {strides = array<i32>} : memref<8x128xf32, #tpu.memory_space<vmem>>, vector<8x128xf32>,
    return
  }
  func.func @transform_0(%arg0: i32, %arg1: i32) -> (i32, i32) {
    %c0_i32 = arith.constant 0 : i32
    %c0_i32_0 = arith.constant 0 : i32
    return %arg0, %c0_i32 : i32, i32
  }
  func.func @transform_1(%arg0: i32, %arg1: i32) -> (i32, i32, i32) {
    %c0_i32 = arith.constant 0 : i32
    %c0_i32_0 = arith.constant 0 : i32
    %c0_i32_1 = arith.constant 0 : i32
    %c0_i32_2 = arith.constant 0 : i32
    return %c0_i32, %c0_i32_0, %c0_i32_1 : i32, i32, i32
  }
  func.func @transform_2(%arg0: i32, %arg1: i32) -> (i32, i32, i32) {
    %c0_i32 = arith.constant 0 : i32
    %c0_i32_0 = arith.constant 0 : i32
    %c0_i32_1 = arith.constant 0 : i32
    %c0_i32_2 = arith.constant 0 : i32
    return %c0_i32, %c0_i32_0, %c0_i32_1 : i32, i32, i32
  }
  func.func @transform_3(%arg0: i32, %arg1: i32) -> (i32, i32, i32) {
    %c0_i32 = arith.constant 0 : i32
    %c0_i32_0 = arith.constant 0 : i32
    %c0_i32_1 = arith.constant 0 : i32
    %c0_i32_2 = arith.constant 0 : i32
    return %c0_i32, %c0_i32_0, %c0_i32_1 : i32, i32, i32
  }
  func.func @transform_4(%arg0: i32, %arg1: i32) -> (i32, i32) {
    %c0_i32 = arith.constant 0 : i32
    %c0_i32_0 = arith.constant 0 : i32
    return %c0_i32, %arg1 : i32, i32
  }
  func.func @transform_5(%arg0: i32, %arg1: i32) -> (i32, i32) {
    %c0_i32 = arith.constant 0 : i32
    %c0_i32_0 = arith.constant 0 : i32
    return %c0_i32, %arg1 : i32, i32
  }
  func.func @transform_6(%arg0: i32, %arg1: i32) -> (i32, i32) {
    %c0_i32 = arith.constant 0 : i32
    return %arg0, %arg1 : i32, i32
  }
}

module attributes {stable_mosaic.version = 11 : i64} {
  func.func @_reprogramming_kernel(%arg0: i32, %arg1: i32, %arg2: memref<8x32xbf16, #tpu.memory_space<vmem>>, %arg3: memref<4x16x8xbf16, #tpu.memory_space<vmem>>, %arg4: memref<4x16x8xbf16, #tpu.memory_space<vmem>>, %arg5: memref<4x32x8xbf16, #tpu.memory_space<vmem>>, %arg6: memref<32x128xbf16, #tpu.memory_space<vmem>>, %arg7: memref<1x128xf32, #tpu.memory_space<vmem>>, %arg8: memref<8x128xf32, #tpu.memory_space<vmem>>, %arg9: memref<8x32xbf16, #tpu.memory_space<vmem>>) attributes {dimension_semantics = [#tpu.dimension_semantics<parallel>, #tpu.dimension_semantics<arbitrary>], iteration_bounds = array<i64: 2, 2>, scalar_prefetch = 0 : i64, scratch_operands = 1 : i64, tpu.core_type = #tpu.core_type<tc>, window_params = [{transform_indices = @transform_0, window_bounds = array<i64: 8, 32>}, {pipeline_mode = #tpu.pipeline_mode<synchronous>, transform_indices = @transform_1, window_bounds = array<i64: 4, 16, 8>}, {pipeline_mode = #tpu.pipeline_mode<synchronous>, transform_indices = @transform_2, window_bounds = array<i64: 4, 16, 8>}, {pipeline_mode = #tpu.pipeline_mode<synchronous>, transform_indices = @transform_3, window_bounds = array<i64: 4, 32, 8>}, {transform_indices = @transform_4, window_bounds = array<i64: 32, 128>}, {transform_indices = @transform_5, window_bounds = array<i64: 1, 128>}, {transform_indices = @transform_6, window_bounds = array<i64: 8, 128>}]} {
    %c0_i32 = arith.constant 0 : i32
    %0 = arith.cmpi eq, %arg1, %c0_i32 : i32
    %1 = arith.extui %0 : i1 to i32
    %c0_i32_0 = arith.constant 0 : i32
    %2 = arith.cmpi ne, %1, %c0_i32_0 : i32
    scf.if %2 {
      %c0_8 = arith.constant 0 : index
      %c0_9 = arith.constant 0 : index
      %10 = vector.load %arg2[%c0_8, %c0_9] : memref<8x32xbf16, #tpu.memory_space<vmem>>, vector<8x32xbf16>
      %c0_10 = arith.constant 0 : index
      %c0_11 = arith.constant 0 : index
      %c0_12 = arith.constant 0 : index
      %11 = vector.load %arg5[%c0_10, %c0_11, %c0_12] : memref<4x32x8xbf16, #tpu.memory_space<vmem>>, vector<1x32x8xbf16>
      %12 = vector.shape_cast %11 : vector<1x32x8xbf16> to vector<32x8xbf16>
      %cst_13 = arith.constant dense<0.000000e+00> : vector<8x8xf32>
      %13 = tpu.matmul %10, %12, %cst_13 {dimension_numbers = #tpu.dot_dimension_numbers<[1], [0], [0], [1], [0, 0, 1, 1], [], []>} : vector<8x32xbf16>, vector<32x8xbf16>, vector<8x8xf32> -> vector<8x8xf32>
      %14 = arith.truncf %13 : vector<8x8xf32> to vector<8x8xbf16>
      %c0_14 = arith.constant 0 : index
      %c0_15 = arith.constant 0 : index
      %c0_16 = arith.constant 0 : index
      %15 = vector.load %arg3[%c0_14, %c0_15, %c0_16] : memref<4x16x8xbf16, #tpu.memory_space<vmem>>, vector<1x16x8xbf16>
      %16 = vector.shape_cast %15 : vector<1x16x8xbf16> to vector<16x8xbf16>
      %cst_17 = arith.constant dense<0.000000e+00> : vector<8x16xf32>
      %17 = tpu.matmul %14, %16, %cst_17 {dimension_numbers = #tpu.dot_dimension_numbers<[1], [1], [0], [0], [0, 0, 1, 0], [], []>} : vector<8x8xbf16>, vector<16x8xbf16>, vector<8x16xf32> -> vector<8x16xf32>
      %cst_18 = arith.constant dense<0xFF800000> : vector<8xf32>
      %18 = vector.multi_reduction <maximumf>, %17, %cst_18 [1] : vector<8x16xf32> to vector<8xf32>
      %19 = vector.shape_cast %18 : vector<8xf32> to vector<8x1xf32>
      %20 = vector.broadcast %19 : vector<8x1xf32> to vector<8x16xf32>
      %21 = arith.subf %17, %20 : vector<8x16xf32>
      %22 = math.exp %21 : vector<8x16xf32>
      %cst_19 = arith.constant dense<0.000000e+00> : vector<8xf32>
      %23 = vector.multi_reduction <add>, %22, %cst_19 [1] : vector<8x16xf32> to vector<8xf32>
      %24 = vector.shape_cast %23 : vector<8xf32> to vector<8x1xf32>
      %25 = tpu.reciprocal %24 {approx = true} : vector<8x1xf32> -> vector<8x1xf32>
      %26 = vector.broadcast %25 : vector<8x1xf32> to vector<8x16xf32>
      %27 = arith.mulf %22, %26 : vector<8x16xf32>
      %28 = arith.truncf %27 : vector<8x16xf32> to vector<8x16xbf16>
      %c0_20 = arith.constant 0 : index
      %c0_21 = arith.constant 0 : index
      %c0_22 = arith.constant 0 : index
      %29 = vector.load %arg4[%c0_20, %c0_21, %c0_22] : memref<4x16x8xbf16, #tpu.memory_space<vmem>>, vector<1x16x8xbf16>
      %30 = vector.shape_cast %29 : vector<1x16x8xbf16> to vector<16x8xbf16>
      %cst_23 = arith.constant dense<0.000000e+00> : vector<8x8xf32>
      %31 = tpu.matmul %28, %30, %cst_23 {dimension_numbers = #tpu.dot_dimension_numbers<[1], [0], [0], [1], [0, 0, 1, 1], [], []>} : vector<8x16xbf16>, vector<16x8xbf16>, vector<8x8xf32> -> vector<8x8xf32>
      %32 = arith.truncf %31 : vector<8x8xf32> to vector<8x8xbf16>
      %c0_24 = arith.constant 0 : index
      %c0_25 = arith.constant 0 : index
      %33 = vector.load %arg9[%c0_24, %c0_25] : memref<8x32xbf16, #tpu.memory_space<vmem>>, vector<8x8xbf16>
      tpu.vector_store %arg9[%c0_24, %c0_25], %32 {strides = array<i32>} : memref<8x32xbf16, #tpu.memory_space<vmem>>, vector<8x8xbf16>,
      %c1 = arith.constant 1 : index
      %c0_26 = arith.constant 0 : index
      %c0_27 = arith.constant 0 : index
      %34 = vector.load %arg5[%c1, %c0_26, %c0_27] : memref<4x32x8xbf16, #tpu.memory_space<vmem>>, vector<1x32x8xbf16>
      %35 = vector.shape_cast %34 : vector<1x32x8xbf16> to vector<32x8xbf16>
      %cst_28 = arith.constant dense<0.000000e+00> : vector<8x8xf32>
      %36 = tpu.matmul %10, %35, %cst_28 {dimension_numbers = #tpu.dot_dimension_numbers<[1], [0], [0], [1], [0, 0, 1, 1], [], []>} : vector<8x32xbf16>, vector<32x8xbf16>, vector<8x8xf32> -> vector<8x8xf32>
      %37 = arith.truncf %36 : vector<8x8xf32> to vector<8x8xbf16>
      %c1_29 = arith.constant 1 : index
      %c0_30 = arith.constant 0 : index
      %c0_31 = arith.constant 0 : index
      %38 = vector.load %arg3[%c1_29, %c0_30, %c0_31] : memref<4x16x8xbf16, #tpu.memory_space<vmem>>, vector<1x16x8xbf16>
      %39 = vector.shape_cast %38 : vector<1x16x8xbf16> to vector<16x8xbf16>
      %cst_32 = arith.constant dense<0.000000e+00> : vector<8x16xf32>
      %40 = tpu.matmul %37, %39, %cst_32 {dimension_numbers = #tpu.dot_dimension_numbers<[1], [1], [0], [0], [0, 0, 1, 0], [], []>} : vector<8x8xbf16>, vector<16x8xbf16>, vector<8x16xf32> -> vector<8x16xf32>
      %cst_33 = arith.constant dense<0xFF800000> : vector<8xf32>
      %41 = vector.multi_reduction <maximumf>, %40, %cst_33 [1] : vector<8x16xf32> to vector<8xf32>
      %42 = vector.shape_cast %41 : vector<8xf32> to vector<8x1xf32>
      %43 = vector.broadcast %42 : vector<8x1xf32> to vector<8x16xf32>
      %44 = arith.subf %40, %43 : vector<8x16xf32>
      %45 = math.exp %44 : vector<8x16xf32>
      %cst_34 = arith.constant dense<0.000000e+00> : vector<8xf32>
      %46 = vector.multi_reduction <add>, %45, %cst_34 [1] : vector<8x16xf32> to vector<8xf32>
      %47 = vector.shape_cast %46 : vector<8xf32> to vector<8x1xf32>
      %48 = tpu.reciprocal %47 {approx = true} : vector<8x1xf32> -> vector<8x1xf32>
      %49 = vector.broadcast %48 : vector<8x1xf32> to vector<8x16xf32>
      %50 = arith.mulf %45, %49 : vector<8x16xf32>
      %51 = arith.truncf %50 : vector<8x16xf32> to vector<8x16xbf16>
      %c1_35 = arith.constant 1 : index
      %c0_36 = arith.constant 0 : index
      %c0_37 = arith.constant 0 : index
      %52 = vector.load %arg4[%c1_35, %c0_36, %c0_37] : memref<4x16x8xbf16, #tpu.memory_space<vmem>>, vector<1x16x8xbf16>
      %53 = vector.shape_cast %52 : vector<1x16x8xbf16> to vector<16x8xbf16>
      %cst_38 = arith.constant dense<0.000000e+00> : vector<8x8xf32>
      %54 = tpu.matmul %51, %53, %cst_38 {dimension_numbers = #tpu.dot_dimension_numbers<[1], [0], [0], [1], [0, 0, 1, 1], [], []>} : vector<8x16xbf16>, vector<16x8xbf16>, vector<8x8xf32> -> vector<8x8xf32>
      %55 = arith.truncf %54 : vector<8x8xf32> to vector<8x8xbf16>
      %c0_39 = arith.constant 0 : index
      %c8 = arith.constant 8 : index
      %56 = vector.load %arg9[%c0_39, %c8] : memref<8x32xbf16, #tpu.memory_space<vmem>>, vector<8x8xbf16>
      tpu.vector_store %arg9[%c0_39, %c8], %55 {strides = array<i32>} : memref<8x32xbf16, #tpu.memory_space<vmem>>, vector<8x8xbf16>,
      %c2 = arith.constant 2 : index
      %c0_40 = arith.constant 0 : index
      %c0_41 = arith.constant 0 : index
      %57 = vector.load %arg5[%c2, %c0_40, %c0_41] : memref<4x32x8xbf16, #tpu.memory_space<vmem>>, vector<1x32x8xbf16>
      %58 = vector.shape_cast %57 : vector<1x32x8xbf16> to vector<32x8xbf16>
      %cst_42 = arith.constant dense<0.000000e+00> : vector<8x8xf32>
      %59 = tpu.matmul %10, %58, %cst_42 {dimension_numbers = #tpu.dot_dimension_numbers<[1], [0], [0], [1], [0, 0, 1, 1], [], []>} : vector<8x32xbf16>, vector<32x8xbf16>, vector<8x8xf32> -> vector<8x8xf32>
      %60 = arith.truncf %59 : vector<8x8xf32> to vector<8x8xbf16>
      %c2_43 = arith.constant 2 : index
      %c0_44 = arith.constant 0 : index
      %c0_45 = arith.constant 0 : index
      %61 = vector.load %arg3[%c2_43, %c0_44, %c0_45] : memref<4x16x8xbf16, #tpu.memory_space<vmem>>, vector<1x16x8xbf16>
      %62 = vector.shape_cast %61 : vector<1x16x8xbf16> to vector<16x8xbf16>
      %cst_46 = arith.constant dense<0.000000e+00> : vector<8x16xf32>
      %63 = tpu.matmul %60, %62, %cst_46 {dimension_numbers = #tpu.dot_dimension_numbers<[1], [1], [0], [0], [0, 0, 1, 0], [], []>} : vector<8x8xbf16>, vector<16x8xbf16>, vector<8x16xf32> -> vector<8x16xf32>
      %cst_47 = arith.constant dense<0xFF800000> : vector<8xf32>
      %64 = vector.multi_reduction <maximumf>, %63, %cst_47 [1] : vector<8x16xf32> to vector<8xf32>
      %65 = vector.shape_cast %64 : vector<8xf32> to vector<8x1xf32>
      %66 = vector.broadcast %65 : vector<8x1xf32> to vector<8x16xf32>
      %67 = arith.subf %63, %66 : vector<8x16xf32>
      %68 = math.exp %67 : vector<8x16xf32>
      %cst_48 = arith.constant dense<0.000000e+00> : vector<8xf32>
      %69 = vector.multi_reduction <add>, %68, %cst_48 [1] : vector<8x16xf32> to vector<8xf32>
      %70 = vector.shape_cast %69 : vector<8xf32> to vector<8x1xf32>
      %71 = tpu.reciprocal %70 {approx = true} : vector<8x1xf32> -> vector<8x1xf32>
      %72 = vector.broadcast %71 : vector<8x1xf32> to vector<8x16xf32>
      %73 = arith.mulf %68, %72 : vector<8x16xf32>
      %74 = arith.truncf %73 : vector<8x16xf32> to vector<8x16xbf16>
      %c2_49 = arith.constant 2 : index
      %c0_50 = arith.constant 0 : index
      %c0_51 = arith.constant 0 : index
      %75 = vector.load %arg4[%c2_49, %c0_50, %c0_51] : memref<4x16x8xbf16, #tpu.memory_space<vmem>>, vector<1x16x8xbf16>
      %76 = vector.shape_cast %75 : vector<1x16x8xbf16> to vector<16x8xbf16>
      %cst_52 = arith.constant dense<0.000000e+00> : vector<8x8xf32>
      %77 = tpu.matmul %74, %76, %cst_52 {dimension_numbers = #tpu.dot_dimension_numbers<[1], [0], [0], [1], [0, 0, 1, 1], [], []>} : vector<8x16xbf16>, vector<16x8xbf16>, vector<8x8xf32> -> vector<8x8xf32>
      %78 = arith.truncf %77 : vector<8x8xf32> to vector<8x8xbf16>
      %c0_53 = arith.constant 0 : index
      %c16 = arith.constant 16 : index
      %79 = vector.load %arg9[%c0_53, %c16] : memref<8x32xbf16, #tpu.memory_space<vmem>>, vector<8x8xbf16>
      tpu.vector_store %arg9[%c0_53, %c16], %78 {strides = array<i32>} : memref<8x32xbf16, #tpu.memory_space<vmem>>, vector<8x8xbf16>,
      %c3 = arith.constant 3 : index
      %c0_54 = arith.constant 0 : index
      %c0_55 = arith.constant 0 : index
      %80 = vector.load %arg5[%c3, %c0_54, %c0_55] : memref<4x32x8xbf16, #tpu.memory_space<vmem>>, vector<1x32x8xbf16>
      %81 = vector.shape_cast %80 : vector<1x32x8xbf16> to vector<32x8xbf16>
      %cst_56 = arith.constant dense<0.000000e+00> : vector<8x8xf32>
      %82 = tpu.matmul %10, %81, %cst_56 {dimension_numbers = #tpu.dot_dimension_numbers<[1], [0], [0], [1], [0, 0, 1, 1], [], []>} : vector<8x32xbf16>, vector<32x8xbf16>, vector<8x8xf32> -> vector<8x8xf32>
      %83 = arith.truncf %82 : vector<8x8xf32> to vector<8x8xbf16>
      %c3_57 = arith.constant 3 : index
      %c0_58 = arith.constant 0 : index
      %c0_59 = arith.constant 0 : index
      %84 = vector.load %arg3[%c3_57, %c0_58, %c0_59] : memref<4x16x8xbf16, #tpu.memory_space<vmem>>, vector<1x16x8xbf16>
      %85 = vector.shape_cast %84 : vector<1x16x8xbf16> to vector<16x8xbf16>
      %cst_60 = arith.constant dense<0.000000e+00> : vector<8x16xf32>
      %86 = tpu.matmul %83, %85, %cst_60 {dimension_numbers = #tpu.dot_dimension_numbers<[1], [1], [0], [0], [0, 0, 1, 0], [], []>} : vector<8x8xbf16>, vector<16x8xbf16>, vector<8x16xf32> -> vector<8x16xf32>
      %cst_61 = arith.constant dense<0xFF800000> : vector<8xf32>
      %87 = vector.multi_reduction <maximumf>, %86, %cst_61 [1] : vector<8x16xf32> to vector<8xf32>
      %88 = vector.shape_cast %87 : vector<8xf32> to vector<8x1xf32>
      %89 = vector.broadcast %88 : vector<8x1xf32> to vector<8x16xf32>
      %90 = arith.subf %86, %89 : vector<8x16xf32>
      %91 = math.exp %90 : vector<8x16xf32>
      %cst_62 = arith.constant dense<0.000000e+00> : vector<8xf32>
      %92 = vector.multi_reduction <add>, %91, %cst_62 [1] : vector<8x16xf32> to vector<8xf32>
      %93 = vector.shape_cast %92 : vector<8xf32> to vector<8x1xf32>
      %94 = tpu.reciprocal %93 {approx = true} : vector<8x1xf32> -> vector<8x1xf32>
      %95 = vector.broadcast %94 : vector<8x1xf32> to vector<8x16xf32>
      %96 = arith.mulf %91, %95 : vector<8x16xf32>
      %97 = arith.truncf %96 : vector<8x16xf32> to vector<8x16xbf16>
      %c3_63 = arith.constant 3 : index
      %c0_64 = arith.constant 0 : index
      %c0_65 = arith.constant 0 : index
      %98 = vector.load %arg4[%c3_63, %c0_64, %c0_65] : memref<4x16x8xbf16, #tpu.memory_space<vmem>>, vector<1x16x8xbf16>
      %99 = vector.shape_cast %98 : vector<1x16x8xbf16> to vector<16x8xbf16>
      %cst_66 = arith.constant dense<0.000000e+00> : vector<8x8xf32>
      %100 = tpu.matmul %97, %99, %cst_66 {dimension_numbers = #tpu.dot_dimension_numbers<[1], [0], [0], [1], [0, 0, 1, 1], [], []>} : vector<8x16xbf16>, vector<16x8xbf16>, vector<8x8xf32> -> vector<8x8xf32>
      %101 = arith.truncf %100 : vector<8x8xf32> to vector<8x8xbf16>
      %c0_67 = arith.constant 0 : index
      %c24 = arith.constant 24 : index
      %102 = vector.load %arg9[%c0_67, %c24] : memref<8x32xbf16, #tpu.memory_space<vmem>>, vector<8x8xbf16>
      tpu.vector_store %arg9[%c0_67, %c24], %101 {strides = array<i32>} : memref<8x32xbf16, #tpu.memory_space<vmem>>, vector<8x8xbf16>,
    } else {
    }
    %c0 = arith.constant 0 : index
    %c0_1 = arith.constant 0 : index
    %3 = vector.load %arg9[%c0, %c0_1] : memref<8x32xbf16, #tpu.memory_space<vmem>>, vector<8x32xbf16>
    %c0_2 = arith.constant 0 : index
    %c0_3 = arith.constant 0 : index
    %4 = vector.load %arg6[%c0_2, %c0_3] : memref<32x128xbf16, #tpu.memory_space<vmem>>, vector<32x128xbf16>
    %cst = arith.constant dense<0.000000e+00> : vector<8x128xf32>
    %5 = tpu.matmul %3, %4, %cst {dimension_numbers = #tpu.dot_dimension_numbers<[1], [0], [0], [1], [0, 0, 1, 1], [], []>} : vector<8x32xbf16>, vector<32x128xbf16>, vector<8x128xf32> -> vector<8x128xf32>
    %c0_4 = arith.constant 0 : index
    %c0_5 = arith.constant 0 : index
    %6 = vector.load %arg7[%c0_4, %c0_5] : memref<1x128xf32, #tpu.memory_space<vmem>>, vector<1x128xf32>
    %7 = vector.broadcast %6 : vector<1x128xf32> to vector<8x128xf32>
    %8 = arith.addf %5, %7 : vector<8x128xf32>
    %c0_6 = arith.constant 0 : index
    %c0_7 = arith.constant 0 : index
    %9 = vector.load %arg8[%c0_6, %c0_7] : memref<8x128xf32, #tpu.memory_space<vmem>>, vector<8x128xf32>
    tpu.vector_store %arg8[%c0_6, %c0_7], %8 {strides = array<i32>} : memref<8x128xf32, #tpu.memory_space<vmem>>, vector<8x128xf32>,
    return
  }
  func.func @transform_0(%arg0: i32, %arg1: i32) -> (i32, i32) {
    %c0_i32 = arith.constant 0 : i32
    %c0_i32_0 = arith.constant 0 : i32
    return %arg0, %c0_i32 : i32, i32
  }
  func.func @transform_1(%arg0: i32, %arg1: i32) -> (i32, i32, i32) {
    %c0_i32 = arith.constant 0 : i32
    %c0_i32_0 = arith.constant 0 : i32
    %c0_i32_1 = arith.constant 0 : i32
    %c0_i32_2 = arith.constant 0 : i32
    return %c0_i32, %c0_i32_0, %c0_i32_1 : i32, i32, i32
  }
  func.func @transform_2(%arg0: i32, %arg1: i32) -> (i32, i32, i32) {
    %c0_i32 = arith.constant 0 : i32
    %c0_i32_0 = arith.constant 0 : i32
    %c0_i32_1 = arith.constant 0 : i32
    %c0_i32_2 = arith.constant 0 : i32
    return %c0_i32, %c0_i32_0, %c0_i32_1 : i32, i32, i32
  }
  func.func @transform_3(%arg0: i32, %arg1: i32) -> (i32, i32, i32) {
    %c0_i32 = arith.constant 0 : i32
    %c0_i32_0 = arith.constant 0 : i32
    %c0_i32_1 = arith.constant 0 : i32
    %c0_i32_2 = arith.constant 0 : i32
    return %c0_i32, %c0_i32_0, %c0_i32_1 : i32, i32, i32
  }
  func.func @transform_4(%arg0: i32, %arg1: i32) -> (i32, i32) {
    %c0_i32 = arith.constant 0 : i32
    %c0_i32_0 = arith.constant 0 : i32
    return %c0_i32, %arg1 : i32, i32
  }
  func.func @transform_5(%arg0: i32, %arg1: i32) -> (i32, i32) {
    %c0_i32 = arith.constant 0 : i32
    %c0_i32_0 = arith.constant 0 : i32
    return %c0_i32, %arg1 : i32, i32
  }
  func.func @transform_6(%arg0: i32, %arg1: i32) -> (i32, i32) {
    %c0_i32 = arith.constant 0 : i32
    return %arg0, %arg1 : i32, i32
  }
}

</mosaic_0001>

<bundles_post_ra>
// kernel: tpu_custom_call.1
= control target key start
LH: loop header
LB: loop body
LE: loop exit
PB: predicated region body
PF: predicated region fallthrough
CT: control target
= control target key end

     0   :  { %s1585_s0 = inlined_call_operand.vmem [shape: bf16[16,32], index: 0, kind: input, shape index: {}]   ;;  %s1586_s1 = inlined_call_operand.vmem [shape: bf16[4,16,8], index: 1, kind: input, shape index: {}]   ;;  %s1587_s2 = inlined_call_operand.vmem [shape: bf16[4,16,8], index: 2, kind: input, shape index: {}]   ;;  %s1588_s3 = inlined_call_operand.vmem [shape: bf16[4,32,8], index: 3, kind: input, shape index: {}]   ;;  %s1589_s4 = inlined_call_operand.vmem [shape: bf16[32,256], index: 4, kind: input, shape index: {}]   ;;  %s1590_s5 = inlined_call_operand.vmem [shape: f32[1,256], index: 5, kind: input, shape index: {}]   ;;  %s1591_s6 = inlined_call_operand.hbm [shape: f32[16,256], index: 6, kind: output, shape index: {}]  }
   0x1   :  { %1598 = sst [smem:[#allocation13_spill]] %s1589_s4 }
   0x2   :  { %11 = vsyncpa [#allocation5], 0 }
   0x3   :  { %13 = vsyncpa [#allocation5 + $0x1], 0  ;;  %s1319_s21 = smov 0   ;;  %s1321_s22 = smov 0  }
   0x4   :  { %s1323_s23 = smov 0   ;;  %s1325_s24 = smov 0  }
   0x5   :  { %s1327_s25 = smov 0   ;;  %s1329_s26 = smov 0  }
   0x6   :  { %s1331_s27 = smov 0   ;;  %s1333_s28 = smov 0  }
   0x7   :  { %s1335_s29 = smov 0   ;;  %s1337_s30 = smov 0  }
   0x8 LB: > { %1599 = sst [smem:[#allocation7_spill]] %s1259_s25  ;;  %s919_s7 = sadd.s32 4294967295, %s1279_s30   ;;  %s1279_s30 = sphi %s1337_s30, %s19_s30   ;;  %s1275_s29 = sphi %s1335_s29, %s1615_s29   ;;  %s1271_s28 = sphi %s1333_s28, %s1614_s28   ;;  %s1267_s27 = sphi %s1331_s27, %s1613_s27   ;;  %s1263_s26 = sphi %s1329_s26, %s1612_s26   ;;  %s1259_s25 = sphi %s1327_s25, %s1611_s25   ;;  %s1255_s24 = sphi %s1325_s24, %s1610_s24   ;;  %s1251_s23 = sphi %s1323_s23, %s1618_s23   ;;  %s1247_s22 = sphi %s1321_s22, %s1617_s22   ;;  %s1243_s21 = sphi %s1319_s21, %s1616_s21  }
   0x9   : > { %1600 = sst [smem:[#allocation8_spill]] %s1271_s28  ;;  %s920_s8 = sadd.s32 4294967294, %s1279_s30  }
   0xa   : > { %1601 = sst [smem:[#allocation9_spill]] %s1275_s29  ;;  %s28_s9 = sadd.s32 1, %s1271_s28 }
   0xb   : > { %s31_s10 = sadd.s32 1, %s1275_s29  ;;  %p29_p0 = scmp.ge.s32.totalorder %s28_s9, 2 }
   0xc   : > { %s127_s11 = sadd.s32 1, %s1259_s25  ;;  %p134_p1 = scmp.ne.s32.totalorder %s1259_s25, %s1255_s24 }
   0xd   : > { %p135_p2 = scmp.eq.s32.totalorder %s1279_s30, 0  ;;  %s1620_s9 = smov (%p29_p0, %s28_s9), 0 }
   0xe   : > { %1602 = sst [smem:[#allocation10_spill]] %s1620_s9  ;;  %s1622_s10 = smov (!%p29_p0, %s31_s10), %s1275_s29 }
   0xf   : > { %s124_s12 = ssub.s32 %s1271_s28, %s1620_s9  ;;  %p1382_p3 = por %p135_p2, %p134_p1 }
  0x10   : > { %p33_p4 = scmp.ge.s32.totalorder %s1622_s10, 2  ;;  %p125_p5 = scmp.eq.s32.totalorder %s124_s12, 0 }
  0x11   : > { %s181_s14 = sadd.s32 1, %s1251_s23  ;;  %p191_p6 = scmp.ne.s32.totalorder %s1251_s23, %s1247_s22 }
  0x12   : > { %s1624_s10 = smov (%p33_p4, %s1622_s10), 0  ;;  %p192_p7 = scmp.eq.s32.totalorder %s919_s7, 3 }
  0x13   : > { %1604 = sst [smem:[#allocation11_spill]] %s1624_s10  ;;  %s176_s16 = ssub.s32 %s1275_s29, %s1624_s10 }
  0x14   : > { %s1392_s15 = scalar_select %p125_p5, %s1259_s25, %s127_s11  }
  0x15   : > { %s178_s17 = sor.u32 %s176_s16, %s124_s12  ;;  %p197_p8 = scmp.ne.s32.totalorder %s1247_s22, %s1243_s21 }
  0x16   : > { %1605 = sst [smem:[#allocation12_spill]] %s1392_s15  ;;  %p179_p9 = scmp.eq.s32.totalorder %s178_s17, 0 }
  0x17   : > { %p1398_p10 = por %p192_p7, %p191_p6  ;;  %p198_p11 = scmp.eq.s32.totalorder %s920_s8, 3 }
  0x18   : > { %s1403_s19 = scalar_select %p179_p9, %s1251_s23, %s181_s14  }
  0x19   : > { %p1405_p12 = por %p198_p11, %p197_p8  ;;  %p922_p13 = scmp.ge.s32.totalorder %s1279_s30, 4 }
  0x1b   : > { %223 = sbr.rel (%p922_p13) target bundleno = 46 (0x2e), region = 28 }
  0x20   : > { %233 = sbr.rel (!%p1382_p3) target bundleno = 46 (0x2e), region = 36  ;;  %s235_s7 = sand.u32 (%p1382_p3), 1, %s1259_s25  }
  0x21   : > { %s924_s11 = sshll.u32 (%p1382_p3), %s1271_s28, 2  ;;  %s923_s12 = sshll.u32 (%p1382_p3), %s235_s7, 4 }
  0x22   : > { %s1608_s4 = sld [smem:[#allocation13_spill]] (%p1382_p3)  ;;  %s237_s14 = scalar_lea.vmem (%p1382_p3), [#allocation3], %s923_s12 }
  0x28   : > { %s239_s8 = scalar_lea.vmem %s1608_s4, %s924_s11 }
  0x29   : > { %v256_v0 = vld [vmem:[%s239_s8] sm:$0xf]  ;;  %v258_v1 = vld [vmem:[%s239_s8 + $0x8] sm:$0xf]  ;;  %v260_v2 = vld [vmem:[%s239_s8 + $0x10] sm:$0xf] }
  0x2a   : > { %257 = vst [vmem:[%s237_s14] sm:$0xf] %v256_v0  ;;  %v262_v3 = vld [vmem:[%s239_s8 + $0x18] sm:$0xf] }
  0x2b   : > { %259 = vst [vmem:[%s237_s14 + $0x4] sm:$0xf] %v258_v1 }
  0x2c   : > { %261 = vst [vmem:[%s237_s14 + $0x8] sm:$0xf] %v260_v2 }
  0x2d   : > { %263 = vst [vmem:[%s237_s14 + $0xc] sm:$0xf] %v262_v3 }
  0x2e PF: > { %p925_p0 = scmp.ge.s32.totalorder %s1279_s30, 1  ;;  %p300_p1 = scmp.lt.s32.totalorder %s1279_s30, 5 }
  0x30   : > { %p301_p2 = pnand %p925_p0, %p300_p1 }
  0x31   : > { %s307_s13 = sand.u32 (!%p301_p2), 1, %s1255_s24   ;;  %s1596_s7 = sand.u32 (!%p301_p2), 1, %s1247_s22  }
  0x32   : > { %304 = sbr.rel (%p301_p2) target bundleno = 1902 (0x76e), region = 81  ;;  %s1421_s11 = sshll.u32 (!%p301_p2), %s307_s13, 4 }
  0x33   : > { %s1425_s12 = sshll.u32 (!%p301_p2), %s1596_s7, 3  ;;  %p343_p3 = scmp.lt.s32.totalorder (!%p301_p2), %s1267_s27, 1 }
  0x34   : > { %p347_p4 = scmp.lt.s32.totalorder (!%p301_p2), %s1263_s26, 1  ;;  %s309_s29 = scalar_lea.vmem (!%p301_p2), [#allocation3], %s1421_s11 }
  0x35   : > { %s342_s28 = scalar_lea.vmem (!%p301_p2), [#allocation4], %s1425_s12  ;;  %p929_p5 = scmp.ne.s32.totalorder (!%p301_p2), %s1263_s26, 0 }
  0x37   : > { %s344_s16 = scalar_select %p343_p3, %s1267_s27, 1 }
  0x38   : > { %s1431_s17 = scalar_select %p347_p4, %s1263_s26, 1 }
  0x39   : > { %s928_s8 = sshll.u32 %s344_s16, 2  ;;  %354 = sbr.rel (%p929_p5) target bundleno = 1760 (0x6e0), region = 89 }
  0x3a   : > { %s346_s10 = scalar_lea.vmem %s1585_s0, %s928_s8  ;;  %s349_s13 = scalar_lea.vmem %s1590_s5, %s1431_s17 }
  0x3b   : > { %s1281_s7 = smov (!%p929_p5), 8   ;;  %s1282_s16 = smov (!%p929_p5), 16  }
  0x3c   : > { %s1283_s4 = smov (!%p929_p5), 24  }
  0x3e   : > { %v1045_v4 = vld [vmem:[%s1588_s3 + $0x8] sm:$0xff]  ;;  %vm397_vm0 = vcmask 64512   ;;  %v1046_v5 = vld [vmem:[%s1586_s1] sm:$0xff]  ;;  %vm372_vm1 = vcmask 261120   ;;  %vm417_vm2 = vcmask 130048   ;;  %v1049_v15 = vld [vmem:[%s1588_s3 + $0x18] sm:$0xff] }
  0x3f   : > { %382 = vmatpush.bf16.msra.mxu0 %v1045_v4  ;;  %v1044_v6 = vld [vmem:[%s1588_s3] sm:$0xff]  ;;  %v402_v7 = vsel %vm397_vm0, %v1046_v5, 0  ;;  %480 = vmatpush.bf16.msra.mxu3 %v1049_v15  ;;  %v1048_v16 = vld [vmem:[%s1588_s3 + $0x10] sm:$0xff]  ;;  %v1050_v23 = vld [vmem:[%s1586_s1 + $0x8] sm:$0xff]  ;;  %vm455_vm3 = vcmask 60416   ;;  %vm557_vm4 = vcmask 126016  }
  0x40   : > { %411 = vmatpush.bf16.xpose.msra.mxu1 %v402_v7  ;;  %v1453_v8 = vld [vmem:[%s346_s10] sm:$0xf]  ;;  %v500_v24 = vsel %vm397_vm0, %v1050_v23, 0  ;;  %v1053_v32 = vld [vmem:[%s1588_s3 + $0x28] sm:$0xff]  ;;  %v1054_v40 = vld [vmem:[%s1586_s1 + $0x10] sm:$0xff]  ;;  %vm659_vm5 = vcmask 191616  }
  0x41   : > { %v1047_v22 = vld [vmem:[%s1587_s2] sm:$0xff]  ;;  %v602_v41 = vsel %vm397_vm0, %v1054_v40, 0  ;;  %v1051_v42 = vld [vmem:[%s1587_s2 + $0x8] sm:$0xff]  ;;  %v1057_v51 = vld [vmem:[%s1588_s3 + $0x38] sm:$0xff]  ;;  %vm761_vm6 = vcmask 257216  }
  0x42   : > { %448 = vmatpush.bf16.msra.mxu2 %v1047_v22  ;;  %v1052_v33 = vld [vmem:[%s1588_s3 + $0x20] sm:$0xff]  ;;  %v1056_v52 = vld [vmem:[%s1588_s3 + $0x30] sm:$0xff]  ;;  %v1058_v60 = vld [vmem:[%s1586_s1 + $0x18] sm:$0xff] }
  0x43   : > { %383 = vmatpush.bf16.msra.mxu0 %v1044_v6  ;;  %481 = vmatpush.bf16.msra.mxu3 %v1048_v16  ;;  %v704_v61 = vsel %vm397_vm0, %v1058_v60, 0 }
  0x46   : > { %938 = vmatmul.msk.bf16.vlgmr.msra.gmra.mxu0 %vm372_vm1, %v1453_v8  ;;  %961 = vmatmul.msk.bf16.vlgmr.msra.gmra.mxu3 %vm372_vm1, %v1453_v8 }
  0x47   : > { %509 = vmatpush.bf16.xpose.msrb.mxu2 %v500_v24  ;;  %611 = vmatpush.bf16.xpose.msrb.mxu3 %v602_v41 }
  0x48   : > { %582 = vmatpush.bf16.msrb.mxu1 %v1053_v32  ;;  %546 = vmatpush.bf16.msrb.mxu0 %v1051_v42 }
  0x4c   : > { %583 = vmatpush.bf16.msrb.mxu1 %v1052_v33  ;;  %684 = vmatpush.bf16.msra.mxu0 %v1057_v51 }
  0x50   : > { %685 = vmatpush.bf16.msra.mxu0 %v1056_v52 }
  0xc3   : > { %v385_v9 = vpop.f32.mrf.mxu0 }
  0xc4   : > { %v389_v10 = vpack.c.bf16 %v385_v9, %v385_v9 }
  0xc6   : > { %943 = vmatmul.msk.bf16.vlgmr.msra.gmra.mxu1 %vm397_vm0, %v389_v10 }
  0xc7   : > { %713 = vmatpush.bf16.xpose.msra.mxu1 %v704_v61 }
  0xc9   : > { %v483_v25 = vpop.f32.mrf.mxu3 }
  0xca   : > { %v487_v31 = vpack.c.bf16 %v483_v25, %v483_v25 }
  0xcb   : > { %v387_v11 = vpop.f32.mrf.mxu0 }
  0xd1   : > { %v485_v26 = vpop.f32.mrf.mxu3 }
  0xd6   : > { %988 = vmatmul.msk.bf16.vlgmr.msrb.gmra.mxu1 %vm372_vm1, %v1453_v8 }
 0x143   : > { %v413_v12 = vpop.f32.mrf.mxu1 }
 0x144   : > { %v418_v13 = vsel %vm417_vm2, %v413_v12, -inf }
 0x145   : > { %419 = vmax.xlane.f32.xlu0 %v418_v13 }
 0x14b   : > { %v415_v14 = vpop.f32.mrf.mxu1 }
 0x153   : > { %v585_v43 = vpop.f32.mrf.mxu1 }
 0x154   : > { %v589_v44 = vpack.c.bf16 %v585_v43, %v585_v43 }
 0x156   : > { %995 = vmatmul.msk.bf16.vlgmr.msrb.gmra.mxu3 %vm397_vm0, %v589_v44 }
 0x15b   : > { %v587_v45 = vpop.f32.mrf.mxu1 }
 0x1b8   : > { %v420_v17 = vpop.xlane.xlu0 %419 }
 0x1b9   : > { %v421_v18 = vsub.f32 %v413_v12, %v420_v17  ;;  %v1059_v17 = vld [vmem:[%s1587_s2 + $0x18] sm:$0xff] }
 0x1ba   : > { %750 = vmatpush.bf16.msra.mxu3 %v1059_v17 }
 0x1bb   : > { %v422_v19 = vmul.f32 1.442695, %v421_v18 }
 0x1bd   : > { %1152 = vpow2.f32 %v422_v19 }
 0x1c3   : > { %v1153_v20 = vpop.eup %1152 }
 0x1c4   : > { %v424_v21 = vsel %vm417_vm2, %v1153_v20, 0.0 }
 0x1c5   : > { %425 = vadd.xlane.f32.xlu0 %v424_v21 }
 0x1d9   : > { %v613_v53 = vpop.f32.mrf.mxu3 }
 0x1da   : > { %v617_v54 = vsel %vm417_vm2, %v613_v53, -inf }
 0x1db   : > { %618 = vmax.xlane.f32.xlu2 %v617_v54 }
 0x1e1   : > { %v615_v56 = vpop.f32.mrf.mxu3 }
 0x238   : > { %v426_v27 = vpop.xlane.xlu0 %425 }
 0x239   : > { %1154 = vrcp.f32 %v426_v27 }
 0x23f   : > { %v1155_v28 = vpop.eup %1154 }
 0x240   : > { %v428_v29 = vmul.f32 %v1155_v28, %v1153_v20 }
 0x242   : > { %v429_v30 = vpack.c.bf16 %v428_v29, %v428_v29 }
 0x244   : > { %948 = vmatmul.msk.bf16.vlgmr.msra.gmra.mxu2 %vm417_vm2, %v429_v30 }
 0x24e   : > { %v619_v62 = vpop.xlane.xlu2 %618 }
 0x24f   : > { %v620_v63 = vsub.f32 %v613_v53, %v619_v62 }
 0x251   : > { %v621_v0 = vmul.f32 1.442695, %v620_v63 }
 0x254   : > { %968 = vmatmul.msk.bf16.vlgmr.msrb.gmra.mxu2 %vm397_vm0, %v487_v31 }
 0x2c7   : > { %v450_v34 = vpop.f32.mrf.mxu2 }
 0x2c8   : > { %v454_v35 = vpack.c.bf16 %v450_v34, %v450_v34 }
 0x2ca   : > { %456 = vst.msk [vmem:[#allocation2] sm:$0xf] %vm455_vm3, %v454_v35 }
 0x2cf   : > { %v452_v36 = vpop.f32.mrf.mxu2 }
 0x2d7   : > { %v511_v37 = vpop.f32.mrf.mxu2 }
 0x2d8   : > { %v515_v38 = vsel %vm417_vm2, %v511_v37, -inf }
 0x2d9   : > { %516 = vmax.xlane.f32.xlu1 %v515_v38 }
 0x2df   : > { %v513_v39 = vpop.f32.mrf.mxu2 }
 0x34c   : > { %v517_v46 = vpop.xlane.xlu1 %516 }
 0x34d   : > { %v518_v47 = vsub.f32 %v511_v37, %v517_v46 }
 0x34f   : > { %v519_v48 = vmul.f32 1.442695, %v518_v47 }
 0x351   : > { %1156 = vpow2.f32 %v519_v48 }
 0x357   : > { %v1157_v49 = vpop.eup %1156 }
 0x358   : > { %v521_v50 = vsel %vm417_vm2, %v1157_v49, 0.0 }
 0x359   : > { %522 = vadd.xlane.f32.xlu1 %v521_v50 }
 0x3cc   : > { %v523_v55 = vpop.xlane.xlu1 %522 }
 0x3cd   : > { %1158 = vrcp.f32 %v523_v55 }
 0x3ce   : > { %1160 = vpow2.f32 %v621_v0 }
 0x3d3   : > { %v1159_v57 = vpop.eup %1158 }
 0x3d4   : > { %v525_v58 = vmul.f32 %v1159_v57, %v1157_v49  ;;  %v1161_v1 = vpop.eup %1160 }
 0x3d5   : > { %v623_v2 = vsel %vm417_vm2, %v1161_v1, 0.0 }
 0x3d6   : > { %v526_v59 = vpack.c.bf16 %v525_v58, %v525_v58  ;;  %624 = vadd.xlane.f32.xlu0 %v623_v2 }
 0x3d8   : > { %975 = vmatmul.msk.bf16.vlgmr.msrb.gmra.mxu0 %vm417_vm2, %v526_v59 }
 0x3e8   : > { %1015 = vmatmul.msk.bf16.vlgmr.msra.gmra.mxu0 %vm372_vm1, %v1453_v8  ;;  %v1055_v8 = vld [vmem:[%s1587_s2 + $0x10] sm:$0xff] }
 0x3e9   : > { %648 = vmatpush.bf16.msra.mxu2 %v1055_v8 }
 0x449   : > { %v625_v9 = vpop.xlane.xlu0 %624 }
 0x44a   : > { %1162 = vrcp.f32 %v625_v9 }
 0x450   : > { %v1163_v10 = vpop.eup %1162 }
 0x451   : > { %v627_v11 = vmul.f32 %v1163_v10, %v1161_v1 }
 0x453   : > { %v628_v12 = vpack.c.bf16 %v627_v11, %v627_v11 }
 0x455   : > { %v548_v3 = vpop.f32.mrf.mxu0  ;;  %1002 = vmatmul.msk.bf16.vlgmr.msra.gmra.mxu2 %vm417_vm2, %v628_v12 }
 0x456   : > { %v552_v16 = vpack.c.bf16 %v548_v3, %v548_v3 }
 0x45d   : > { %v550_v4 = vpop.f32.mrf.mxu0 }
 0x465   : > { %v687_v5 = vpop.f32.mrf.mxu0 }
 0x466   : > { %v691_v6 = vpack.c.bf16 %v687_v5, %v687_v5 }
 0x468   : > { %1022 = vmatmul.msk.bf16.vlgmr.msra.gmra.mxu1 %vm397_vm0, %v691_v6 }
 0x46d   : > { %v689_v7 = vpop.f32.mrf.mxu0 }
 0x4d8   : > { %v650_v18 = vpop.f32.mrf.mxu2 }
 0x4d9   : > { %v654_v19 = vpack.c.bf16 %v650_v18, %v650_v18 }
 0x4db   : > { %656 = vrot.lane.b32.xlu0 %v654_v19, %s1282_s16 }
 0x4e0   : > { %v652_v20 = vpop.f32.mrf.mxu2 }
 0x4e5   : > { %v715_v13 = vpop.f32.mrf.mxu1 }
 0x4e6   : > { %v719_v14 = vsel %vm417_vm2, %v715_v13, -inf }
 0x4e7   : > { %720 = vmax.xlane.f32.xlu2 %v719_v14 }
 0x4ed   : > { %v717_v15 = vpop.f32.mrf.mxu1 }
 0x4ff   : > { %554 = vrot.lane.b32.xlu2 %v552_v16, %s1281_s7 }
 0x54d   : > { %v657_v27 = vpop.permute.xlu0 %656 }
 0x55a   : > { %v721_v21 = vpop.xlane.xlu2 %720 }
 0x55b   : > { %v722_v22 = vsub.f32 %v715_v13, %v721_v21 }
 0x55d   : > { %v723_v23 = vmul.f32 1.442695, %v722_v22 }
 0x55f   : > { %1164 = vpow2.f32 %v723_v23 }
 0x562   : > { %v555_v24 = vpop.permute.xlu2 %554 }
 0x563   : > { %558 = vst.msk [vmem:[#allocation2] sm:$0xf] %vm557_vm4, %v555_v24 }
 0x564   : > { %660 = vst.msk [vmem:[#allocation2] sm:$0xf] %vm659_vm5, %v657_v27 }
 0x565   : > { %v1165_v25 = vpop.eup %1164 }
 0x566   : > { %v725_v26 = vsel %vm417_vm2, %v1165_v25, 0.0 }
 0x567   : > { %726 = vadd.xlane.f32.xlu1 %v725_v26 }
 0x5da   : > { %v727_v28 = vpop.xlane.xlu1 %726 }
 0x5db   : > { %1166 = vrcp.f32 %v727_v28 }
 0x5e1   : > { %v1167_v29 = vpop.eup %1166 }
 0x5e2   : > { %v729_v30 = vmul.f32 %v1167_v29, %v1165_v25 }
 0x5e4   : > { %v730_v31 = vpack.c.bf16 %v729_v30, %v729_v30 }
 0x5e6   : > { %1029 = vmatmul.msk.bf16.vlgmr.msra.gmra.mxu3 %vm417_vm2, %v730_v31 }
 0x669   : > { %v752_v32 = vpop.f32.mrf.mxu3 }
 0x66a   : > { %v756_v33 = vpack.c.bf16 %v752_v32, %v752_v32 }
 0x66c   : > { %758 = vrot.lane.b32.xlu1 %v756_v33, %s1283_s4 }
 0x671   : > { %v754_v34 = vpop.f32.mrf.mxu3 }
 0x6de   : > { %v759_v35 = vpop.permute.xlu1 %758 }
 0x6df   : > { %762 = vst.msk [vmem:[#allocation2] sm:$0xf] %vm761_vm6, %v759_v35 }
 0x6e0 PF: > { %v1061_v36 = vld [vmem:[%s309_s29 + $0x8] sm:$0xff]  ;;  %v1060_v37 = vld [vmem:[%s309_s29] sm:$0xff]  ;;  %vm784_vm7 = vcmask 261120   ;;  %s1040_s8 = sshll.u32 %s1267_s27, 1  ;;  %s817_s29 = sshll.u32 %s342_s28, 4  ;;  %s818_s29 = int_to_ptr.vmem [resolvable:$true] %s817_s29 }
 0x6e1   : > { %794 = vmatpush.bf16.msra.mxu0 %v1061_v36  ;;  %s813_s25 = sadd.s32 %s1263_s26, %s1040_s8  ;;  %v1168_v39 = vld [vmem:[%s349_s13] ss:$0 sm:$0xff]  ;;  %s1609_s26 = sand.u32 1, %s1247_s22  }
 0x6e2   : > { %s1041_s9 = sshll.u32 %s813_s25, 3  ;;  %s803_s27 = scalar_lea.sflag [#allocation5], %s1609_s26 }
 0x6e3   : > { %s815_s7 = scalar_lea.hbm %s1591_s6, %s1041_s9  ;;  %s1189_s8 = scalar_lea.hbm %s1591_s6, 32 }
 0x6e4   : > { %s819_s11 = sshll.u32 %s815_s7, 4  ;;  %s820_s11 = int_to_ptr.hbm [resolvable:$true] %s819_s11 }
 0x6e5   : > { %795 = vmatpush.bf16.msra.mxu0 %v1060_v37  ;;  %s1183_s16 = sshra.s32 %s820_s11, 4  ;;  %s1184_s16 = int_to_ptr.hbm [resolvable:$true] %s1183_s16 }
 0x6e6   : > { %v763_v38 = vld [vmem:[#allocation2] sm:$0xf]  ;;  %s1185_s4 = scalar_lea.hbm %s1184_s16, 8  ;;  %p1190_p9 = scmp.lt.s32.totalorder %s1184_s16, %s1591_s6 }
 0x6e7   : > { %p1186_p6 = scmp.ne.s32.totalorder %s1184_s16, %s1185_s4  ;;  %p1191_p11 = scmp.lt.s32.totalorder %s1189_s8, %s1185_s4 }
 0x6e8   : > { %1038 = vmatmul.msk.bf16.vlgmr.msra.gmra.mxu0 %vm784_vm7, %v763_v38 }
 0x6e9   : > { %p1187_p7 = pnand %p1186_p6, %p1398_p10  ;;  %p1192_p13 = por %p1191_p11, %p1190_p9 }
 0x6eb   : > { %p1188_p8 = pneg %p1187_p7 }
 0x6ed   : > { %p1193_p0 = pnand %p1192_p13, %p1188_p8 }
 0x765   : > { %v797_v40 = vpop.f32.mrf.mxu0 }
 0x766   : > { %v798_v41 = vadd.f32 %v1168_v39, %v797_v40 }
 0x768   : > { %801 = vst [vmem:[%s342_s28] sm:$0xff] %v798_v41 }
 0x769   : > { %1196 = shalt.err (!%p1193_p0)
}
 0x76a   : > { %1062 = dma.vmem_to_hbm [thread:$0]  (%p1398_p10), %s818_s29, 128, %s820_s11, %s803_s27  }
 0x76d   : > { %v799_v42 = vpop.f32.mrf.mxu0 }
 0x76e PF: > { %p1068_p1 = scmp.ge.s32.totalorder %s1279_s30, 2  ;;  %s831_s28 = sand.u32 1, %s1243_s21  }
 0x76f   : > { %s832_s12 = scalar_lea.sflag [#allocation5], %s831_s28 }
 0x770   : > { %p1065_p2 = pnand %p1068_p1, %p1405_p12 }
 0x772   : > { %p1066_p3 = pneg %p1065_p2 }
 0x774   : > { %1238 = dma.done.wait (%p1066_p3), %s832_s12, 128  }
 0x775   : > { %1240 = vsyncadd (%p1066_p3), %s832_s12, 4294967168  ;;  %s19_s30 = sadd.s32 1, %s1279_s30   ;;  %s1610_s24 = sld [smem:[#allocation7_spill]] }
 0x776   : > { %p16_p4 = scmp.ge.s32.totalorder %s19_s30, 6   ;;  %s1611_s25 = sld [smem:[#allocation12_spill]] }
 0x777   : > { %s1612_s26 = sld [smem:[#allocation8_spill]]  ;;  %s1616_s21 = smov %s1247_s22 }
 0x778   : > { %s1613_s27 = sld [smem:[#allocation9_spill]]  ;;  %s1617_s22 = smov %s1251_s23 }
 0x779   : > { %s1614_s28 = sld [smem:[#allocation10_spill]]  ;;  %s1618_s23 = smov %s1403_s19 }
 0x77a   : > { %s1615_s29 = sld [smem:[#allocation11_spill]]  ;;  %18 = sbr.rel (!%p16_p4) target bundleno = 8 (0x8), region = 144 }
 0x77f   :  { %838 = vsyncpa [#allocation5], 1 }
 0x780   :  { %840 = vsyncpa [#allocation5 + $0x1], 1 }

// kernel: tpu_custom_call.1
= control target key start
LH: loop header
LB: loop body
LE: loop exit
PB: predicated region body
PF: predicated region fallthrough
CT: control target
= control target key end

     0   :  { %s1585_s0 = inlined_call_operand.vmem [shape: bf16[16,32], index: 0, kind: input, shape index: {}]   ;;  %s1586_s1 = inlined_call_operand.vmem [shape: bf16[4,16,8], index: 1, kind: input, shape index: {}]   ;;  %s1587_s2 = inlined_call_operand.vmem [shape: bf16[4,16,8], index: 2, kind: input, shape index: {}]   ;;  %s1588_s3 = inlined_call_operand.vmem [shape: bf16[4,32,8], index: 3, kind: input, shape index: {}]   ;;  %s1589_s4 = inlined_call_operand.vmem [shape: bf16[32,256], index: 4, kind: input, shape index: {}]   ;;  %s1590_s5 = inlined_call_operand.vmem [shape: f32[1,256], index: 5, kind: input, shape index: {}]   ;;  %s1591_s6 = inlined_call_operand.hbm [shape: f32[16,256], index: 6, kind: output, shape index: {}]  }
   0x1   :  { %1598 = sst [smem:[#allocation13_spill]] %s1589_s4 }
   0x2   :  { %11 = vsyncpa [#allocation5], 0 }
   0x3   :  { %13 = vsyncpa [#allocation5 + $0x1], 0  ;;  %s1319_s21 = smov 0   ;;  %s1321_s22 = smov 0  }
   0x4   :  { %s1323_s23 = smov 0   ;;  %s1325_s24 = smov 0  }
   0x5   :  { %s1327_s25 = smov 0   ;;  %s1329_s26 = smov 0  }
   0x6   :  { %s1331_s27 = smov 0   ;;  %s1333_s28 = smov 0  }
   0x7   :  { %s1335_s29 = smov 0   ;;  %s1337_s30 = smov 0  }
   0x8 LB: > { %1599 = sst [smem:[#allocation7_spill]] %s1259_s25  ;;  %s919_s7 = sadd.s32 4294967295, %s1279_s30   ;;  %s1279_s30 = sphi %s1337_s30, %s19_s30   ;;  %s1275_s29 = sphi %s1335_s29, %s1615_s29   ;;  %s1271_s28 = sphi %s1333_s28, %s1614_s28   ;;  %s1267_s27 = sphi %s1331_s27, %s1613_s27   ;;  %s1263_s26 = sphi %s1329_s26, %s1612_s26   ;;  %s1259_s25 = sphi %s1327_s25, %s1611_s25   ;;  %s1255_s24 = sphi %s1325_s24, %s1610_s24   ;;  %s1251_s23 = sphi %s1323_s23, %s1618_s23   ;;  %s1247_s22 = sphi %s1321_s22, %s1617_s22   ;;  %s1243_s21 = sphi %s1319_s21, %s1616_s21  }
   0x9   : > { %1600 = sst [smem:[#allocation8_spill]] %s1271_s28  ;;  %s920_s8 = sadd.s32 4294967294, %s1279_s30  }
   0xa   : > { %1601 = sst [smem:[#allocation9_spill]] %s1275_s29  ;;  %s28_s9 = sadd.s32 1, %s1271_s28 }
   0xb   : > { %s31_s10 = sadd.s32 1, %s1275_s29  ;;  %p29_p0 = scmp.ge.s32.totalorder %s28_s9, 2 }
   0xc   : > { %s127_s11 = sadd.s32 1, %s1259_s25  ;;  %p134_p1 = scmp.ne.s32.totalorder %s1259_s25, %s1255_s24 }
   0xd   : > { %p135_p2 = scmp.eq.s32.totalorder %s1279_s30, 0  ;;  %s1620_s9 = smov (%p29_p0, %s28_s9), 0 }
   0xe   : > { %1602 = sst [smem:[#allocation10_spill]] %s1620_s9  ;;  %s1622_s10 = smov (!%p29_p0, %s31_s10), %s1275_s29 }
   0xf   : > { %s124_s12 = ssub.s32 %s1271_s28, %s1620_s9  ;;  %p1382_p3 = por %p135_p2, %p134_p1 }
  0x10   : > { %p33_p4 = scmp.ge.s32.totalorder %s1622_s10, 2  ;;  %p125_p5 = scmp.eq.s32.totalorder %s124_s12, 0 }
  0x11   : > { %s181_s14 = sadd.s32 1, %s1251_s23  ;;  %p191_p6 = scmp.ne.s32.totalorder %s1251_s23, %s1247_s22 }
  0x12   : > { %s1624_s10 = smov (%p33_p4, %s1622_s10), 0  ;;  %p192_p7 = scmp.eq.s32.totalorder %s919_s7, 3 }
  0x13   : > { %1604 = sst [smem:[#allocation11_spill]] %s1624_s10  ;;  %s176_s16 = ssub.s32 %s1275_s29, %s1624_s10 }
  0x14   : > { %s1392_s15 = scalar_select %p125_p5, %s1259_s25, %s127_s11  }
  0x15   : > { %s178_s17 = sor.u32 %s176_s16, %s124_s12  ;;  %p197_p8 = scmp.ne.s32.totalorder %s1247_s22, %s1243_s21 }
  0x16   : > { %1605 = sst [smem:[#allocation12_spill]] %s1392_s15  ;;  %p179_p9 = scmp.eq.s32.totalorder %s178_s17, 0 }
  0x17   : > { %p1398_p10 = por %p192_p7, %p191_p6  ;;  %p198_p11 = scmp.eq.s32.totalorder %s920_s8, 3 }
  0x18   : > { %s1403_s19 = scalar_select %p179_p9, %s1251_s23, %s181_s14  }
  0x19   : > { %p1405_p12 = por %p198_p11, %p197_p8  ;;  %p922_p13 = scmp.ge.s32.totalorder %s1279_s30, 4 }
  0x1b   : > { %223 = sbr.rel (%p922_p13) target bundleno = 46 (0x2e), region = 28 }
  0x20   : > { %233 = sbr.rel (!%p1382_p3) target bundleno = 46 (0x2e), region = 36  ;;  %s235_s7 = sand.u32 (%p1382_p3), 1, %s1259_s25  }
  0x21   : > { %s924_s11 = sshll.u32 (%p1382_p3), %s1271_s28, 2  ;;  %s923_s12 = sshll.u32 (%p1382_p3), %s235_s7, 4 }
  0x22   : > { %s1608_s4 = sld [smem:[#allocation13_spill]] (%p1382_p3)  ;;  %s237_s14 = scalar_lea.vmem (%p1382_p3), [#allocation3], %s923_s12 }
  0x28   : > { %s239_s8 = scalar_lea.vmem %s1608_s4, %s924_s11 }
  0x29   : > { %v256_v0 = vld [vmem:[%s239_s8] sm:$0xf]  ;;  %v258_v1 = vld [vmem:[%s239_s8 + $0x8] sm:$0xf]  ;;  %v260_v2 = vld [vmem:[%s239_s8 + $0x10] sm:$0xf] }
  0x2a   : > { %257 = vst [vmem:[%s237_s14] sm:$0xf] %v256_v0  ;;  %v262_v3 = vld [vmem:[%s239_s8 + $0x18] sm:$0xf] }
  0x2b   : > { %259 = vst [vmem:[%s237_s14 + $0x4] sm:$0xf] %v258_v1 }
  0x2c   : > { %261 = vst [vmem:[%s237_s14 + $0x8] sm:$0xf] %v260_v2 }
  0x2d   : > { %263 = vst [vmem:[%s237_s14 + $0xc] sm:$0xf] %v262_v3 }
  0x2e PF: > { %p925_p0 = scmp.ge.s32.totalorder %s1279_s30, 1  ;;  %p300_p1 = scmp.lt.s32.totalorder %s1279_s30, 5 }
  0x30   : > { %p301_p2 = pnand %p925_p0, %p300_p1 }
  0x31   : > { %s307_s13 = sand.u32 (!%p301_p2), 1, %s1255_s24   ;;  %s1596_s7 = sand.u32 (!%p301_p2), 1, %s1247_s22  }
  0x32   : > { %304 = sbr.rel (%p301_p2) target bundleno = 1902 (0x76e), region = 81  ;;  %s1421_s11 = sshll.u32 (!%p301_p2), %s307_s13, 4 }
  0x33   : > { %s1425_s12 = sshll.u32 (!%p301_p2), %s1596_s7, 3  ;;  %p343_p3 = scmp.lt.s32.totalorder (!%p301_p2), %s1267_s27, 1 }
  0x34   : > { %p347_p4 = scmp.lt.s32.totalorder (!%p301_p2), %s1263_s26, 1  ;;  %s309_s29 = scalar_lea.vmem (!%p301_p2), [#allocation3], %s1421_s11 }
  0x35   : > { %s342_s28 = scalar_lea.vmem (!%p301_p2), [#allocation4], %s1425_s12  ;;  %p929_p5 = scmp.ne.s32.totalorder (!%p301_p2), %s1263_s26, 0 }
  0x37   : > { %s344_s16 = scalar_select %p343_p3, %s1267_s27, 1 }
  0x38   : > { %s1431_s17 = scalar_select %p347_p4, %s1263_s26, 1 }
  0x39   : > { %s928_s8 = sshll.u32 %s344_s16, 2  ;;  %354 = sbr.rel (%p929_p5) target bundleno = 1760 (0x6e0), region = 89 }
  0x3a   : > { %s346_s10 = scalar_lea.vmem %s1585_s0, %s928_s8  ;;  %s349_s13 = scalar_lea.vmem %s1590_s5, %s1431_s17 }
  0x3b   : > { %s1281_s7 = smov (!%p929_p5), 8   ;;  %s1282_s16 = smov (!%p929_p5), 16  }
  0x3c   : > { %s1283_s4 = smov (!%p929_p5), 24  }
  0x3e   : > { %v1045_v4 = vld [vmem:[%s1588_s3 + $0x8] sm:$0xff]  ;;  %vm397_vm0 = vcmask 64512   ;;  %v1046_v5 = vld [vmem:[%s1586_s1] sm:$0xff]  ;;  %vm372_vm1 = vcmask 261120   ;;  %vm417_vm2 = vcmask 130048   ;;  %v1049_v15 = vld [vmem:[%s1588_s3 + $0x18] sm:$0xff] }
  0x3f   : > { %382 = vmatpush.bf16.msra.mxu0 %v1045_v4  ;;  %v1044_v6 = vld [vmem:[%s1588_s3] sm:$0xff]  ;;  %v402_v7 = vsel %vm397_vm0, %v1046_v5, 0  ;;  %480 = vmatpush.bf16.msra.mxu3 %v1049_v15  ;;  %v1048_v16 = vld [vmem:[%s1588_s3 + $0x10] sm:$0xff]  ;;  %v1050_v23 = vld [vmem:[%s1586_s1 + $0x8] sm:$0xff]  ;;  %vm455_vm3 = vcmask 60416   ;;  %vm557_vm4 = vcmask 126016  }
  0x40   : > { %411 = vmatpush.bf16.xpose.msra.mxu1 %v402_v7  ;;  %v1453_v8 = vld [vmem:[%s346_s10] sm:$0xf]  ;;  %v500_v24 = vsel %vm397_vm0, %v1050_v23, 0  ;;  %v1053_v32 = vld [vmem:[%s1588_s3 + $0x28] sm:$0xff]  ;;  %v1054_v40 = vld [vmem:[%s1586_s1 + $0x10] sm:$0xff]  ;;  %vm659_vm5 = vcmask 191616  }
  0x41   : > { %v1047_v22 = vld [vmem:[%s1587_s2] sm:$0xff]  ;;  %v602_v41 = vsel %vm397_vm0, %v1054_v40, 0  ;;  %v1051_v42 = vld [vmem:[%s1587_s2 + $0x8] sm:$0xff]  ;;  %v1057_v51 = vld [vmem:[%s1588_s3 + $0x38] sm:$0xff]  ;;  %vm761_vm6 = vcmask 257216  }
  0x42   : > { %448 = vmatpush.bf16.msra.mxu2 %v1047_v22  ;;  %v1052_v33 = vld [vmem:[%s1588_s3 + $0x20] sm:$0xff]  ;;  %v1056_v52 = vld [vmem:[%s1588_s3 + $0x30] sm:$0xff]  ;;  %v1058_v60 = vld [vmem:[%s1586_s1 + $0x18] sm:$0xff] }
  0x43   : > { %383 = vmatpush.bf16.msra.mxu0 %v1044_v6  ;;  %481 = vmatpush.bf16.msra.mxu3 %v1048_v16  ;;  %v704_v61 = vsel %vm397_vm0, %v1058_v60, 0 }
  0x46   : > { %938 = vmatmul.msk.bf16.vlgmr.msra.gmra.mxu0 %vm372_vm1, %v1453_v8  ;;  %961 = vmatmul.msk.bf16.vlgmr.msra.gmra.mxu3 %vm372_vm1, %v1453_v8 }
  0x47   : > { %509 = vmatpush.bf16.xpose.msrb.mxu2 %v500_v24  ;;  %611 = vmatpush.bf16.xpose.msrb.mxu3 %v602_v41 }
  0x48   : > { %582 = vmatpush.bf16.msrb.mxu1 %v1053_v32  ;;  %546 = vmatpush.bf16.msrb.mxu0 %v1051_v42 }
  0x4c   : > { %583 = vmatpush.bf16.msrb.mxu1 %v1052_v33  ;;  %684 = vmatpush.bf16.msra.mxu0 %v1057_v51 }
  0x50   : > { %685 = vmatpush.bf16.msra.mxu0 %v1056_v52 }
  0xc3   : > { %v385_v9 = vpop.f32.mrf.mxu0 }
  0xc4   : > { %v389_v10 = vpack.c.bf16 %v385_v9, %v385_v9 }
  0xc6   : > { %943 = vmatmul.msk.bf16.vlgmr.msra.gmra.mxu1 %vm397_vm0, %v389_v10 }
  0xc7   : > { %713 = vmatpush.bf16.xpose.msra.mxu1 %v704_v61 }
  0xc9   : > { %v483_v25 = vpop.f32.mrf.mxu3 }
  0xca   : > { %v487_v31 = vpack.c.bf16 %v483_v25, %v483_v25 }
  0xcb   : > { %v387_v11 = vpop.f32.mrf.mxu0 }
  0xd1   : > { %v485_v26 = vpop.f32.mrf.mxu3 }
  0xd6   : > { %988 = vmatmul.msk.bf16.vlgmr.msrb.gmra.mxu1 %vm372_vm1, %v1453_v8 }
 0x143   : > { %v413_v12 = vpop.f32.mrf.mxu1 }
 0x144   : > { %v418_v13 = vsel %vm417_vm2, %v413_v12, -inf }
 0x145   : > { %419 = vmax.xlane.f32.xlu0 %v418_v13 }
 0x14b   : > { %v415_v14 = vpop.f32.mrf.mxu1 }
 0x153   : > { %v585_v43 = vpop.f32.mrf.mxu1 }
 0x154   : > { %v589_v44 = vpack.c.bf16 %v585_v43, %v585_v43 }
 0x156   : > { %995 = vmatmul.msk.bf16.vlgmr.msrb.gmra.mxu3 %vm397_vm0, %v589_v44 }
 0x15b   : > { %v587_v45 = vpop.f32.mrf.mxu1 }
 0x1b8   : > { %v420_v17 = vpop.xlane.xlu0 %419 }
 0x1b9   : > { %v421_v18 = vsub.f32 %v413_v12, %v420_v17  ;;  %v1059_v17 = vld [vmem:[%s1587_s2 + $0x18] sm:$0xff] }
 0x1ba   : > { %750 = vmatpush.bf16.msra.mxu3 %v1059_v17 }
 0x1bb   : > { %v422_v19 = vmul.f32 1.442695, %v421_v18 }
 0x1bd   : > { %1152 = vpow2.f32 %v422_v19 }
 0x1c3   : > { %v1153_v20 = vpop.eup %1152 }
 0x1c4   : > { %v424_v21 = vsel %vm417_vm2, %v1153_v20, 0.0 }
 0x1c5   : > { %425 = vadd.xlane.f32.xlu0 %v424_v21 }
 0x1d9   : > { %v613_v53 = vpop.f32.mrf.mxu3 }
 0x1da   : > { %v617_v54 = vsel %vm417_vm2, %v613_v53, -inf }
 0x1db   : > { %618 = vmax.xlane.f32.xlu2 %v617_v54 }
 0x1e1   : > { %v615_v56 = vpop.f32.mrf.mxu3 }
 0x238   : > { %v426_v27 = vpop.xlane.xlu0 %425 }
 0x239   : > { %1154 = vrcp.f32 %v426_v27 }
 0x23f   : > { %v1155_v28 = vpop.eup %1154 }
 0x240   : > { %v428_v29 = vmul.f32 %v1155_v28, %v1153_v20 }
 0x242   : > { %v429_v30 = vpack.c.bf16 %v428_v29, %v428_v29 }
 0x244   : > { %948 = vmatmul.msk.bf16.vlgmr.msra.gmra.mxu2 %vm417_vm2, %v429_v30 }
 0x24e   : > { %v619_v62 = vpop.xlane.xlu2 %618 }
 0x24f   : > { %v620_v63 = vsub.f32 %v613_v53, %v619_v62 }
 0x251   : > { %v621_v0 = vmul.f32 1.442695, %v620_v63 }
 0x254   : > { %968 = vmatmul.msk.bf16.vlgmr.msrb.gmra.mxu2 %vm397_vm0, %v487_v31 }
 0x2c7   : > { %v450_v34 = vpop.f32.mrf.mxu2 }
 0x2c8   : > { %v454_v35 = vpack.c.bf16 %v450_v34, %v450_v34 }
 0x2ca   : > { %456 = vst.msk [vmem:[#allocation2] sm:$0xf] %vm455_vm3, %v454_v35 }
 0x2cf   : > { %v452_v36 = vpop.f32.mrf.mxu2 }
 0x2d7   : > { %v511_v37 = vpop.f32.mrf.mxu2 }
 0x2d8   : > { %v515_v38 = vsel %vm417_vm2, %v511_v37, -inf }
 0x2d9   : > { %516 = vmax.xlane.f32.xlu1 %v515_v38 }
 0x2df   : > { %v513_v39 = vpop.f32.mrf.mxu2 }
 0x34c   : > { %v517_v46 = vpop.xlane.xlu1 %516 }
 0x34d   : > { %v518_v47 = vsub.f32 %v511_v37, %v517_v46 }
 0x34f   : > { %v519_v48 = vmul.f32 1.442695, %v518_v47 }
 0x351   : > { %1156 = vpow2.f32 %v519_v48 }
 0x357   : > { %v1157_v49 = vpop.eup %1156 }
 0x358   : > { %v521_v50 = vsel %vm417_vm2, %v1157_v49, 0.0 }
 0x359   : > { %522 = vadd.xlane.f32.xlu1 %v521_v50 }
 0x3cc   : > { %v523_v55 = vpop.xlane.xlu1 %522 }
 0x3cd   : > { %1158 = vrcp.f32 %v523_v55 }
 0x3ce   : > { %1160 = vpow2.f32 %v621_v0 }
 0x3d3   : > { %v1159_v57 = vpop.eup %1158 }
 0x3d4   : > { %v525_v58 = vmul.f32 %v1159_v57, %v1157_v49  ;;  %v1161_v1 = vpop.eup %1160 }
 0x3d5   : > { %v623_v2 = vsel %vm417_vm2, %v1161_v1, 0.0 }
 0x3d6   : > { %v526_v59 = vpack.c.bf16 %v525_v58, %v525_v58  ;;  %624 = vadd.xlane.f32.xlu0 %v623_v2 }
 0x3d8   : > { %975 = vmatmul.msk.bf16.vlgmr.msrb.gmra.mxu0 %vm417_vm2, %v526_v59 }
 0x3e8   : > { %1015 = vmatmul.msk.bf16.vlgmr.msra.gmra.mxu0 %vm372_vm1, %v1453_v8  ;;  %v1055_v8 = vld [vmem:[%s1587_s2 + $0x10] sm:$0xff] }
 0x3e9   : > { %648 = vmatpush.bf16.msra.mxu2 %v1055_v8 }
 0x449   : > { %v625_v9 = vpop.xlane.xlu0 %624 }
 0x44a   : > { %1162 = vrcp.f32 %v625_v9 }
 0x450   : > { %v1163_v10 = vpop.eup %1162 }
 0x451   : > { %v627_v11 = vmul.f32 %v1163_v10, %v1161_v1 }
 0x453   : > { %v628_v12 = vpack.c.bf16 %v627_v11, %v627_v11 }
 0x455   : > { %v548_v3 = vpop.f32.mrf.mxu0  ;;  %1002 = vmatmul.msk.bf16.vlgmr.msra.gmra.mxu2 %vm417_vm2, %v628_v12 }
 0x456   : > { %v552_v16 = vpack.c.bf16 %v548_v3, %v548_v3 }
 0x45d   : > { %v550_v4 = vpop.f32.mrf.mxu0 }
 0x465   : > { %v687_v5 = vpop.f32.mrf.mxu0 }
 0x466   : > { %v691_v6 = vpack.c.bf16 %v687_v5, %v687_v5 }
 0x468   : > { %1022 = vmatmul.msk.bf16.vlgmr.msra.gmra.mxu1 %vm397_vm0, %v691_v6 }
 0x46d   : > { %v689_v7 = vpop.f32.mrf.mxu0 }
 0x4d8   : > { %v650_v18 = vpop.f32.mrf.mxu2 }
 0x4d9   : > { %v654_v19 = vpack.c.bf16 %v650_v18, %v650_v18 }
 0x4db   : > { %656 = vrot.lane.b32.xlu0 %v654_v19, %s1282_s16 }
 0x4e0   : > { %v652_v20 = vpop.f32.mrf.mxu2 }
 0x4e5   : > { %v715_v13 = vpop.f32.mrf.mxu1 }
 0x4e6   : > { %v719_v14 = vsel %vm417_vm2, %v715_v13, -inf }
 0x4e7   : > { %720 = vmax.xlane.f32.xlu2 %v719_v14 }
 0x4ed   : > { %v717_v15 = vpop.f32.mrf.mxu1 }
 0x4ff   : > { %554 = vrot.lane.b32.xlu2 %v552_v16, %s1281_s7 }
 0x54d   : > { %v657_v27 = vpop.permute.xlu0 %656 }
 0x55a   : > { %v721_v21 = vpop.xlane.xlu2 %720 }
 0x55b   : > { %v722_v22 = vsub.f32 %v715_v13, %v721_v21 }
 0x55d   : > { %v723_v23 = vmul.f32 1.442695, %v722_v22 }
 0x55f   : > { %1164 = vpow2.f32 %v723_v23 }
 0x562   : > { %v555_v24 = vpop.permute.xlu2 %554 }
 0x563   : > { %558 = vst.msk [vmem:[#allocation2] sm:$0xf] %vm557_vm4, %v555_v24 }
 0x564   : > { %660 = vst.msk [vmem:[#allocation2] sm:$0xf] %vm659_vm5, %v657_v27 }
 0x565   : > { %v1165_v25 = vpop.eup %1164 }
 0x566   : > { %v725_v26 = vsel %vm417_vm2, %v1165_v25, 0.0 }
 0x567   : > { %726 = vadd.xlane.f32.xlu1 %v725_v26 }
 0x5da   : > { %v727_v28 = vpop.xlane.xlu1 %726 }
 0x5db   : > { %1166 = vrcp.f32 %v727_v28 }
 0x5e1   : > { %v1167_v29 = vpop.eup %1166 }
 0x5e2   : > { %v729_v30 = vmul.f32 %v1167_v29, %v1165_v25 }
 0x5e4   : > { %v730_v31 = vpack.c.bf16 %v729_v30, %v729_v30 }
 0x5e6   : > { %1029 = vmatmul.msk.bf16.vlgmr.msra.gmra.mxu3 %vm417_vm2, %v730_v31 }
 0x669   : > { %v752_v32 = vpop.f32.mrf.mxu3 }
 0x66a   : > { %v756_v33 = vpack.c.bf16 %v752_v32, %v752_v32 }
 0x66c   : > { %758 = vrot.lane.b32.xlu1 %v756_v33, %s1283_s4 }
 0x671   : > { %v754_v34 = vpop.f32.mrf.mxu3 }
 0x6de   : > { %v759_v35 = vpop.permute.xlu1 %758 }
 0x6df   : > { %762 = vst.msk [vmem:[#allocation2] sm:$0xf] %vm761_vm6, %v759_v35 }
 0x6e0 PF: > { %v1061_v36 = vld [vmem:[%s309_s29 + $0x8] sm:$0xff]  ;;  %v1060_v37 = vld [vmem:[%s309_s29] sm:$0xff]  ;;  %vm784_vm7 = vcmask 261120   ;;  %s1040_s8 = sshll.u32 %s1267_s27, 1  ;;  %s817_s29 = sshll.u32 %s342_s28, 4  ;;  %s818_s29 = int_to_ptr.vmem [resolvable:$true] %s817_s29 }
 0x6e1   : > { %794 = vmatpush.bf16.msra.mxu0 %v1061_v36  ;;  %s813_s25 = sadd.s32 %s1263_s26, %s1040_s8  ;;  %v1168_v39 = vld [vmem:[%s349_s13] ss:$0 sm:$0xff]  ;;  %s1609_s26 = sand.u32 1, %s1247_s22  }
 0x6e2   : > { %s1041_s9 = sshll.u32 %s813_s25, 3  ;;  %s803_s27 = scalar_lea.sflag [#allocation5], %s1609_s26 }
 0x6e3   : > { %s815_s7 = scalar_lea.hbm %s1591_s6, %s1041_s9  ;;  %s1189_s8 = scalar_lea.hbm %s1591_s6, 32 }
 0x6e4   : > { %s819_s11 = sshll.u32 %s815_s7, 4  ;;  %s820_s11 = int_to_ptr.hbm [resolvable:$true] %s819_s11 }
 0x6e5   : > { %795 = vmatpush.bf16.msra.mxu0 %v1060_v37  ;;  %s1183_s16 = sshra.s32 %s820_s11, 4  ;;  %s1184_s16 = int_to_ptr.hbm [resolvable:$true] %s1183_s16 }
 0x6e6   : > { %v763_v38 = vld [vmem:[#allocation2] sm:$0xf]  ;;  %s1185_s4 = scalar_lea.hbm %s1184_s16, 8  ;;  %p1190_p9 = scmp.lt.s32.totalorder %s1184_s16, %s1591_s6 }
 0x6e7   : > { %p1186_p6 = scmp.ne.s32.totalorder %s1184_s16, %s1185_s4  ;;  %p1191_p11 = scmp.lt.s32.totalorder %s1189_s8, %s1185_s4 }
 0x6e8   : > { %1038 = vmatmul.msk.bf16.vlgmr.msra.gmra.mxu0 %vm784_vm7, %v763_v38 }
 0x6e9   : > { %p1187_p7 = pnand %p1186_p6, %p1398_p10  ;;  %p1192_p13 = por %p1191_p11, %p1190_p9 }
 0x6eb   : > { %p1188_p8 = pneg %p1187_p7 }
 0x6ed   : > { %p1193_p0 = pnand %p1192_p13, %p1188_p8 }
 0x765   : > { %v797_v40 = vpop.f32.mrf.mxu0 }
 0x766   : > { %v798_v41 = vadd.f32 %v1168_v39, %v797_v40 }
 0x768   : > { %801 = vst [vmem:[%s342_s28] sm:$0xff] %v798_v41 }
 0x769   : > { %1196 = shalt.err (!%p1193_p0)
}
 0x76a   : > { %1062 = dma.vmem_to_hbm [thread:$0]  (%p1398_p10), %s818_s29, 128, %s820_s11, %s803_s27  }
 0x76d   : > { %v799_v42 = vpop.f32.mrf.mxu0 }
 0x76e PF: > { %p1068_p1 = scmp.ge.s32.totalorder %s1279_s30, 2  ;;  %s831_s28 = sand.u32 1, %s1243_s21  }
 0x76f   : > { %s832_s12 = scalar_lea.sflag [#allocation5], %s831_s28 }
 0x770   : > { %p1065_p2 = pnand %p1068_p1, %p1405_p12 }
 0x772   : > { %p1066_p3 = pneg %p1065_p2 }
 0x774   : > { %1238 = dma.done.wait (%p1066_p3), %s832_s12, 128  }
 0x775   : > { %1240 = vsyncadd (%p1066_p3), %s832_s12, 4294967168  ;;  %s19_s30 = sadd.s32 1, %s1279_s30   ;;  %s1610_s24 = sld [smem:[#allocation7_spill]] }
 0x776   : > { %p16_p4 = scmp.ge.s32.totalorder %s19_s30, 6   ;;  %s1611_s25 = sld [smem:[#allocation12_spill]] }
 0x777   : > { %s1612_s26 = sld [smem:[#allocation8_spill]]  ;;  %s1616_s21 = smov %s1247_s22 }
 0x778   : > { %s1613_s27 = sld [smem:[#allocation9_spill]]  ;;  %s1617_s22 = smov %s1251_s23 }
 0x779   : > { %s1614_s28 = sld [smem:[#allocation10_spill]]  ;;  %s1618_s23 = smov %s1403_s19 }
 0x77a   : > { %s1615_s29 = sld [smem:[#allocation11_spill]]  ;;  %18 = sbr.rel (!%p16_p4) target bundleno = 8 (0x8), region = 144 }
 0x77f   :  { %838 = vsyncpa [#allocation5], 1 }
 0x780   :  { %840 = vsyncpa [#allocation5 + $0x1], 1 }

</bundles_post_ra>
